<compile_context>
chip_gen: v7x
topology: tpu7x:2x2x1
jax: 0.10.0
libtpu: 0.0.40
codegen_flags: <defaults>
</compile_context>

<pallas_src>
import functools

import jax
import jax.numpy as jnp
from jax.experimental import pallas as pl
from jax.experimental.pallas import tpu as pltpu


def _frm_kernel(H, W,
                x_ref, wq_ref, bq_ref, wk_ref, bk_ref, wv_ref, bv_ref,
                w3_ref, mask_ref, bn_scale_ref, bn_shift_ref,
                out_ref):
    HW = H * W
    xf = x_ref[0]                                                     # (HW, Cp), lane-dense

    # ---- self-attention path: 1x1 convs as channel matmuls (C padded to 128) ----
    q = jnp.dot(xf, wq_ref[...], preferred_element_type=jnp.float32) + bq_ref[...]
    k = jnp.dot(xf, wk_ref[...], preferred_element_type=jnp.float32) + bk_ref[...]
    # gamma is folded into wv/bv, so "v" here is already gamma * value_conv(x).
    v = jnp.dot(xf, wv_ref[...], preferred_element_type=jnp.float32) + bv_ref[...]

    # scores[i, j] = q_i . k_j   (contraction over the padded channel dim, K = Cp)
    scores = jax.lax.dot_general(q, k, (((1,), (1,)), ((), ())),
                                 preferred_element_type=jnp.float32)  # (HW, HW)
    scores = scores - jnp.max(scores, axis=-1, keepdims=True)
    p = jnp.exp(scores)
    inv = pl.reciprocal(jnp.sum(p, axis=-1, keepdims=True), approx=True)
    attn_feat = jnp.dot(p * inv, v, preferred_element_type=jnp.float32)  # = gamma*attn_feat

    # ---- enhance path: 3x3 conv (padding=1) as im2col ----
    # 9 shifted windows via sublane rolls of the flattened (HW, Cp) tile; out-of-bounds
    # taps are zeroed by a precomputed boundary mask aligned with the concat layout.
    wins = []
    for dy in (-1, 0, 1):
        for dx in (-1, 0, 1):
            off = dy * W + dx
            if off == 0:
                wins.append(xf)
            else:
                # win[i] = xf[(i + off) mod HW]; wrap-around rows are masked below.
                wins.append(pltpu.roll(xf, (-off) % HW, axis=0))
    patch = jnp.concatenate(wins, axis=-1) * mask_ref[...]            # (HW, 9*Cp)
    conv = jnp.dot(patch, w3_ref[...], preferred_element_type=jnp.float32)  # (HW, Cp)
    enh = jnp.maximum(conv * bn_scale_ref[...] + bn_shift_ref[...], 0.0)

    # ---- combine: out = x + gamma*attn_feat + enhanced ----
    out_ref[0] = xf + attn_feat + enh


def feature_refinement_pallas(x_nchw, params):
    B, C, H, W = x_nchw.shape
    HW = H * W
    Cq = params["Wq"].shape[0]
    Cp = ((C + 127) // 128) * 128          # lane-dense channel width (pad to mult. of 128)

    def pad2(m, rows, cols):
        return jnp.pad(m, ((0, rows - m.shape[0]), (0, cols - m.shape[1])))

    # NCHW -> channels-last, flatten spatial, zero-pad channels to Cp.
    x_flat = jnp.transpose(x_nchw, (0, 2, 3, 1)).reshape(B, HW, C)
    x_flat = jnp.pad(x_flat, ((0, 0), (0, 0), (0, Cp - C)))

    gamma = params["gamma"][0]
    wq_t = pad2(params["Wq"].T, Cp, Cp)                    # (Cp, Cp); live block (C, Cq)
    wk_t = pad2(params["Wk"].T, Cp, Cp)
    wv_t = pad2(params["Wv"].T * gamma, Cp, Cp)            # gamma folded into value path
    bq = pad2(params["bq"].reshape(1, Cq), 1, Cp)
    bk = pad2(params["bk"].reshape(1, Cq), 1, Cp)
    bv = pad2((params["bv"] * gamma).reshape(1, C), 1, Cp)

    # torch conv weight (O, I, 3, 3) -> im2col matrix (9*Cp, Cp); tap t = ky*3 + kx,
    # rows within tap t indexed by (padded) input channel, cols by (padded) output channel.
    w3 = jnp.transpose(params["W3"], (2, 3, 1, 0))          # (3, 3, I, O)
    w3 = jnp.pad(w3, ((0, 0), (0, 0), (0, Cp - C), (0, Cp - C))).reshape(9 * Cp, Cp)

    # Boundary mask aligned with the concatenated (HW, 9*Cp) im2col patch.
    ys = jnp.repeat(jnp.arange(H), W).reshape(HW, 1)
    xs = jnp.tile(jnp.arange(W), H).reshape(HW, 1)
    cols = []
    for dy in (-1, 0, 1):
        for dx in (-1, 0, 1):
            valid = ((ys + dy >= 0) & (ys + dy < H) & (xs + dx >= 0) & (xs + dx < W))
            cols.append(jnp.broadcast_to(valid.astype(jnp.float32), (HW, Cp)))
    win_mask = jnp.concatenate(cols, axis=-1)               # (HW, 9*Cp)

    # Inference-mode BatchNorm folded into scale/shift (zero-padded channels stay 0).
    eps = 1e-5
    inv_std = 1.0 / jnp.sqrt(params["bn_var"] + eps)
    bn_scale = pad2((params["bn_w"] * inv_std).reshape(1, C), 1, Cp)
    bn_shift = pad2((params["bn_b"] - params["bn_mean"] * params["bn_w"] * inv_std)
                    .reshape(1, C), 1, Cp)

    kernel = functools.partial(_frm_kernel, H, W)
    out_flat = pl.pallas_call(
        kernel,
        out_shape=jax.ShapeDtypeStruct((B, HW, Cp), jnp.float32),
        grid_spec=pltpu.PrefetchScalarGridSpec(
            num_scalar_prefetch=0,
            grid=(B,),
            in_specs=[
                pl.BlockSpec((1, HW, Cp), lambda b: (b, 0, 0)),    # x (flattened NHWC, padded)
                pl.BlockSpec((Cp, Cp), lambda b: (0, 0)),          # Wq^T
                pl.BlockSpec((1, Cp), lambda b: (0, 0)),           # bq
                pl.BlockSpec((Cp, Cp), lambda b: (0, 0)),          # Wk^T
                pl.BlockSpec((1, Cp), lambda b: (0, 0)),           # bk
                pl.BlockSpec((Cp, Cp), lambda b: (0, 0)),          # gamma * Wv^T
                pl.BlockSpec((1, Cp), lambda b: (0, 0)),           # gamma * bv
                pl.BlockSpec((9 * Cp, Cp), lambda b: (0, 0)),      # 3x3 conv im2col weights
                pl.BlockSpec((HW, 9 * Cp), lambda b: (0, 0)),      # boundary mask
                pl.BlockSpec((1, Cp), lambda b: (0, 0)),           # BN scale
                pl.BlockSpec((1, Cp), lambda b: (0, 0)),           # BN shift
            ],
            out_specs=pl.BlockSpec((1, HW, Cp), lambda b: (b, 0, 0)),
        ),
        compiler_params=pltpu.CompilerParams(
            dimension_semantics=("parallel",)),                    # megacore split over batch
    )(x_flat, wq_t, bq, wk_t, bk, wv_t, bv, w3, win_mask, bn_scale, bn_shift)

    out = out_flat[..., :C].reshape(B, H, W, C)
    return jnp.transpose(out, (0, 3, 1, 2))


def init_params(key, C, reduction_ratio=8):
    Cq = C // reduction_ratio
    ks = jax.random.split(key, 12)
    s1 = 1.0 / jnp.sqrt(C)
    s3 = 1.0 / jnp.sqrt(C * 9.0)
    return dict(
        Wq=jax.random.normal(ks[0], (Cq, C), jnp.float32) * s1,
        bq=jax.random.normal(ks[1], (Cq,), jnp.float32) * 0.1,
        Wk=jax.random.normal(ks[2], (Cq, C), jnp.float32) * s1,
        bk=jax.random.normal(ks[3], (Cq,), jnp.float32) * 0.1,
        Wv=jax.random.normal(ks[4], (C, C), jnp.float32) * s1,
        bv=jax.random.normal(ks[5], (C,), jnp.float32) * 0.1,
        W3=jax.random.normal(ks[6], (C, C, 3, 3), jnp.float32) * s3,   # no bias (matches module)
        bn_w=jax.random.uniform(ks[7], (C,), jnp.float32, 0.5, 1.5),
        bn_b=jax.random.normal(ks[8], (C,), jnp.float32) * 0.1,
        bn_mean=jax.random.normal(ks[9], (C,), jnp.float32) * 0.1,
        bn_var=jax.random.uniform(ks[10], (C,), jnp.float32, 0.5, 1.5),
        # nn.Parameter(torch.zeros(1)); nonzero here so the attention path matters.
        gamma=jnp.asarray([0.5], jnp.float32),
    )


def reference(x, p):
    """Pure-JAX re-implementation of the PyTorch forward (NCHW, eval-mode BN)."""
    B, C, H, W = x.shape
    HW = H * W
    hi = jax.lax.Precision.HIGHEST

    def conv1x1(w, b):
        return jnp.einsum("bchw,oc->bohw", x, w, precision=hi) + b[None, :, None, None]

    q = conv1x1(p["Wq"], p["bq"]).reshape(B, -1, HW).transpose(0, 2, 1)   # (B, HW, Cq)
    k = conv1x1(p["Wk"], p["bk"]).reshape(B, -1, HW)                      # (B, Cq, HW)
    attn = jax.nn.softmax(jnp.einsum("bic,bcj->bij", q, k, precision=hi), axis=-1)
    v = conv1x1(p["Wv"], p["bv"]).reshape(B, -1, HW)                      # (B, C, HW)
    attn_feat = jnp.einsum("bcj,bij->bci", v, attn, precision=hi).reshape(B, C, H, W)

    conv = jax.lax.conv_general_dilated(
        x, p["W3"], (1, 1), "SAME",
        dimension_numbers=("NCHW", "OIHW", "NCHW"), precision=hi)
    eps = 1e-5
    inv_std = 1.0 / jnp.sqrt(p["bn_var"] + eps)
    scale = (p["bn_w"] * inv_std)[None, :, None, None]
    shift = (p["bn_b"] - p["bn_mean"] * p["bn_w"] * inv_std)[None, :, None, None]
    enh = jax.nn.relu(conv * scale + shift)
    return x + p["gamma"][0] * attn_feat + enh


if __name__ == "__main__":
    key = jax.random.PRNGKey(0)
    kx, kp = jax.random.split(key)
    B, C, H, W = 2, 16, 8, 8           # in_channels=16, reduction_ratio=8 -> Cq=2
    x = jax.random.normal(kx, (B, C, H, W), jnp.float32)
    params = init_params(kp, C, reduction_ratio=8)

    out = jax.block_until_ready(feature_refinement_pallas(x, params))

    ref = reference(x, params)
    assert out.shape == ref.shape == (B, C, H, W)
    max_err = float(jnp.max(jnp.abs(out - ref)))
    assert jnp.allclose(out, ref, rtol=2e-2, atol=2e-2), f"max abs err {max_err}"
    print("KERNEL_OK")
</pallas_src>

<mosaic_0001>
module attributes {stable_mosaic.version = 11 : i64} {
  func.func @_frm_kernel(%arg0: i32, %arg1: memref<1x64x128xf32, #tpu.memory_space<vmem>>, %arg2: memref<128x128xf32, #tpu.memory_space<vmem>>, %arg3: memref<1x128xf32, #tpu.memory_space<vmem>>, %arg4: memref<128x128xf32, #tpu.memory_space<vmem>>, %arg5: memref<1x128xf32, #tpu.memory_space<vmem>>, %arg6: memref<128x128xf32, #tpu.memory_space<vmem>>, %arg7: memref<1x128xf32, #tpu.memory_space<vmem>>, %arg8: memref<1152x128xf32, #tpu.memory_space<vmem>>, %arg9: memref<64x1152xf32, #tpu.memory_space<vmem>>, %arg10: memref<1x128xf32, #tpu.memory_space<vmem>>, %arg11: memref<1x128xf32, #tpu.memory_space<vmem>>, %arg12: memref<1x64x128xf32, #tpu.memory_space<vmem>>) attributes {dimension_semantics = [#tpu.dimension_semantics<parallel>], iteration_bounds = array<i64: 2>, scalar_prefetch = 0 : i64, scratch_operands = 0 : i64, tpu.core_type = #tpu.core_type<tc>, window_params = [{transform_indices = @transform_0, window_bounds = array<i64: 1, 64, 128>}, {pipeline_mode = #tpu.pipeline_mode<synchronous>, transform_indices = @transform_1, window_bounds = array<i64: 128, 128>}, {pipeline_mode = #tpu.pipeline_mode<synchronous>, transform_indices = @transform_2, window_bounds = array<i64: 1, 128>}, {pipeline_mode = #tpu.pipeline_mode<synchronous>, transform_indices = @transform_3, window_bounds = array<i64: 128, 128>}, {pipeline_mode = #tpu.pipeline_mode<synchronous>, transform_indices = @transform_4, window_bounds = array<i64: 1, 128>}, {pipeline_mode = #tpu.pipeline_mode<synchronous>, transform_indices = @transform_5, window_bounds = array<i64: 128, 128>}, {pipeline_mode = #tpu.pipeline_mode<synchronous>, transform_indices = @transform_6, window_bounds = array<i64: 1, 128>}, {pipeline_mode = #tpu.pipeline_mode<synchronous>, transform_indices = @transform_7, window_bounds = array<i64: 1152, 128>}, {pipeline_mode = #tpu.pipeline_mode<synchronous>, transform_indices = @transform_8, window_bounds = array<i64: 64, 1152>}, {pipeline_mode = #tpu.pipeline_mode<synchronous>, transform_indices = @transform_9, window_bounds = array<i64: 1, 128>}, {pipeline_mode = #tpu.pipeline_mode<synchronous>, transform_indices = @transform_10, window_bounds = array<i64: 1, 128>}, {transform_indices = @transform_11, window_bounds = array<i64: 1, 64, 128>}]} {
    %c0 = arith.constant 0 : index
    %c0_0 = arith.constant 0 : index
    %c0_1 = arith.constant 0 : index
    %0 = vector.load %arg1[%c0, %c0_0, %c0_1] : memref<1x64x128xf32, #tpu.memory_space<vmem>>, vector<1x64x128xf32>
    %1 = vector.shape_cast %0 : vector<1x64x128xf32> to vector<64x128xf32>
    %c0_2 = arith.constant 0 : index
    %c0_3 = arith.constant 0 : index
    %2 = vector.load %arg2[%c0_2, %c0_3] : memref<128x128xf32, #tpu.memory_space<vmem>>, vector<128x128xf32>
    %cst = arith.constant dense<0.000000e+00> : vector<64x128xf32>
    %3 = tpu.matmul %1, %2, %cst {dimension_numbers = #tpu.dot_dimension_numbers<[1], [0], [0], [1], [0, 0, 1, 1], [], []>} : vector<64x128xf32>, vector<128x128xf32>, vector<64x128xf32> -> vector<64x128xf32>
    %c0_4 = arith.constant 0 : index
    %c0_5 = arith.constant 0 : index
    %4 = vector.load %arg3[%c0_4, %c0_5] : memref<1x128xf32, #tpu.memory_space<vmem>>, vector<1x128xf32>
    %5 = vector.broadcast %4 : vector<1x128xf32> to vector<64x128xf32>
    %6 = arith.addf %3, %5 : vector<64x128xf32>
    %c0_6 = arith.constant 0 : index
    %c0_7 = arith.constant 0 : index
    %7 = vector.load %arg4[%c0_6, %c0_7] : memref<128x128xf32, #tpu.memory_space<vmem>>, vector<128x128xf32>
    %cst_8 = arith.constant dense<0.000000e+00> : vector<64x128xf32>
    %8 = tpu.matmul %1, %7, %cst_8 {dimension_numbers = #tpu.dot_dimension_numbers<[1], [0], [0], [1], [0, 0, 1, 1], [], []>} : vector<64x128xf32>, vector<128x128xf32>, vector<64x128xf32> -> vector<64x128xf32>
    %c0_9 = arith.constant 0 : index
    %c0_10 = arith.constant 0 : index
    %9 = vector.load %arg5[%c0_9, %c0_10] : memref<1x128xf32, #tpu.memory_space<vmem>>, vector<1x128xf32>
    %10 = vector.broadcast %9 : vector<1x128xf32> to vector<64x128xf32>
    %11 = arith.addf %8, %10 : vector<64x128xf32>
    %c0_11 = arith.constant 0 : index
    %c0_12 = arith.constant 0 : index
    %12 = vector.load %arg6[%c0_11, %c0_12] : memref<128x128xf32, #tpu.memory_space<vmem>>, vector<128x128xf32>
    %cst_13 = arith.constant dense<0.000000e+00> : vector<64x128xf32>
    %13 = tpu.matmul %1, %12, %cst_13 {dimension_numbers = #tpu.dot_dimension_numbers<[1], [0], [0], [1], [0, 0, 1, 1], [], []>} : vector<64x128xf32>, vector<128x128xf32>, vector<64x128xf32> -> vector<64x128xf32>
    %c0_14 = arith.constant 0 : index
    %c0_15 = arith.constant 0 : index
    %14 = vector.load %arg7[%c0_14, %c0_15] : memref<1x128xf32, #tpu.memory_space<vmem>>, vector<1x128xf32>
    %15 = vector.broadcast %14 : vector<1x128xf32> to vector<64x128xf32>
    %16 = arith.addf %13, %15 : vector<64x128xf32>
    %cst_16 = arith.constant dense<0.000000e+00> : vector<64x64xf32>
    %17 = tpu.matmul %6, %11, %cst_16 {dimension_numbers = #tpu.dot_dimension_numbers<[1], [1], [0], [0], [0, 0, 1, 0], [], []>} : vector<64x128xf32>, vector<64x128xf32>, vector<64x64xf32> -> vector<64x64xf32>
    %cst_17 = arith.constant dense<0xFF800000> : vector<64xf32>
    %18 = vector.multi_reduction <maximumf>, %17, %cst_17 [1] : vector<64x64xf32> to vector<64xf32>
    %19 = vector.shape_cast %18 : vector<64xf32> to vector<64x1xf32>
    %20 = vector.broadcast %19 : vector<64x1xf32> to vector<64x64xf32>
    %21 = arith.subf %17, %20 : vector<64x64xf32>
    %22 = math.exp %21 : vector<64x64xf32>
    %cst_18 = arith.constant dense<0.000000e+00> : vector<64xf32>
    %23 = vector.multi_reduction <add>, %22, %cst_18 [1] : vector<64x64xf32> to vector<64xf32>
    %24 = vector.shape_cast %23 : vector<64xf32> to vector<64x1xf32>
    %25 = tpu.reciprocal %24 {approx = true} : vector<64x1xf32> -> vector<64x1xf32>
    %26 = vector.broadcast %25 : vector<64x1xf32> to vector<64x64xf32>
    %27 = arith.mulf %22, %26 : vector<64x64xf32>
    %cst_19 = arith.constant dense<0.000000e+00> : vector<64x128xf32>
    %28 = tpu.matmul %27, %16, %cst_19 {dimension_numbers = #tpu.dot_dimension_numbers<[1], [0], [0], [1], [0, 0, 1, 1], [], []>} : vector<64x64xf32>, vector<64x128xf32>, vector<64x128xf32> -> vector<64x128xf32>
    %c9_i32 = arith.constant 9 : i32
    %29 = tpu.dynamic_rotate %1 by %c9_i32 dim 0 : vector<64x128xf32>, i32 -> vector<64x128xf32>
    %c8_i32 = arith.constant 8 : i32
    %30 = tpu.dynamic_rotate %1 by %c8_i32 dim 0 : vector<64x128xf32>, i32 -> vector<64x128xf32>
    %c7_i32 = arith.constant 7 : i32
    %31 = tpu.dynamic_rotate %1 by %c7_i32 dim 0 : vector<64x128xf32>, i32 -> vector<64x128xf32>
    %c1_i32 = arith.constant 1 : i32
    %32 = tpu.dynamic_rotate %1 by %c1_i32 dim 0 : vector<64x128xf32>, i32 -> vector<64x128xf32>
    %c63_i32 = arith.constant 63 : i32
    %33 = tpu.dynamic_rotate %1 by %c63_i32 dim 0 : vector<64x128xf32>, i32 -> vector<64x128xf32>
    %c57_i32 = arith.constant 57 : i32
    %34 = tpu.dynamic_rotate %1 by %c57_i32 dim 0 : vector<64x128xf32>, i32 -> vector<64x128xf32>
    %c56_i32 = arith.constant 56 : i32
    %35 = tpu.dynamic_rotate %1 by %c56_i32 dim 0 : vector<64x128xf32>, i32 -> vector<64x128xf32>
    %c55_i32 = arith.constant 55 : i32
    %36 = tpu.dynamic_rotate %1 by %c55_i32 dim 0 : vector<64x128xf32>, i32 -> vector<64x128xf32>
    %37 = tpu.concatenate %29, %30, %31, %32, %1, %33, %34, %35, %36 in 1 : vector<64x128xf32>, vector<64x128xf32>, vector<64x128xf32>, vector<64x128xf32>, vector<64x128xf32>, vector<64x128xf32>, vector<64x128xf32>, vector<64x128xf32>, vector<64x128xf32> -> vector<64x1152xf32>
    %c0_20 = arith.constant 0 : index
    %c0_21 = arith.constant 0 : index
    %38 = vector.load %arg9[%c0_20, %c0_21] : memref<64x1152xf32, #tpu.memory_space<vmem>>, vector<64x1152xf32>
    %39 = arith.mulf %37, %38 : vector<64x1152xf32>
    %c0_22 = arith.constant 0 : index
    %c0_23 = arith.constant 0 : index
    %40 = vector.load %arg8[%c0_22, %c0_23] : memref<1152x128xf32, #tpu.memory_space<vmem>>, vector<1152x128xf32>
    %cst_24 = arith.constant dense<0.000000e+00> : vector<64x128xf32>
    %41 = tpu.matmul %39, %40, %cst_24 {dimension_numbers = #tpu.dot_dimension_numbers<[1], [0], [0], [1], [0, 0, 1, 1], [], []>} : vector<64x1152xf32>, vector<1152x128xf32>, vector<64x128xf32> -> vector<64x128xf32>
    %c0_25 = arith.constant 0 : index
    %c0_26 = arith.constant 0 : index
    %42 = vector.load %arg10[%c0_25, %c0_26] : memref<1x128xf32, #tpu.memory_space<vmem>>, vector<1x128xf32>
    %43 = vector.broadcast %42 : vector<1x128xf32> to vector<64x128xf32>
    %44 = arith.mulf %41, %43 : vector<64x128xf32>
    %c0_27 = arith.constant 0 : index
    %c0_28 = arith.constant 0 : index
    %45 = vector.load %arg11[%c0_27, %c0_28] : memref<1x128xf32, #tpu.memory_space<vmem>>, vector<1x128xf32>
    %46 = vector.broadcast %45 : vector<1x128xf32> to vector<64x128xf32>
    %47 = arith.addf %44, %46 : vector<64x128xf32>
    %cst_29 = arith.constant 0.000000e+00 : f32
    %48 = vector.broadcast %cst_29 : f32 to vector<64x128xf32>
    %49 = arith.maximumf %47, %48 : vector<64x128xf32>
    %50 = arith.addf %1, %28 : vector<64x128xf32>
    %51 = arith.addf %50, %49 : vector<64x128xf32>
    %c0_30 = arith.constant 0 : index
    %c0_31 = arith.constant 0 : index
    %c0_32 = arith.constant 0 : index
    %52 = vector.load %arg12[%c0_30, %c0_31, %c0_32] : memref<1x64x128xf32, #tpu.memory_space<vmem>>, vector<1x64x128xf32>
    %53 = vector.shape_cast %52 : vector<1x64x128xf32> to vector<64x128xf32>
    %54 = vector.shape_cast %51 : vector<64x128xf32> to vector<1x64x128xf32>
    tpu.vector_store %arg12[%c0_30, %c0_31, %c0_32], %54 {strides = array<i32>} : memref<1x64x128xf32, #tpu.memory_space<vmem>>, vector<1x64x128xf32>,
    return
  }
  func.func @transform_0(%arg0: i32) -> (i32, i32, i32) {
    %c0_i32 = arith.constant 0 : i32
    %c0_i32_0 = arith.constant 0 : i32
    %c0_i32_1 = arith.constant 0 : i32
    return %arg0, %c0_i32, %c0_i32_0 : i32, i32, i32
  }
  func.func @transform_1(%arg0: i32) -> (i32, i32) {
    %c0_i32 = arith.constant 0 : i32
    %c0_i32_0 = arith.constant 0 : i32
    %c0_i32_1 = arith.constant 0 : i32
    return %c0_i32, %c0_i32_0 : i32, i32
  }
  func.func @transform_2(%arg0: i32) -> (i32, i32) {
    %c0_i32 = arith.constant 0 : i32
    %c0_i32_0 = arith.constant 0 : i32
    %c0_i32_1 = arith.constant 0 : i32
    return %c0_i32, %c0_i32_0 : i32, i32
  }
  func.func @transform_3(%arg0: i32) -> (i32, i32) {
    %c0_i32 = arith.constant 0 : i32
    %c0_i32_0 = arith.constant 0 : i32
    %c0_i32_1 = arith.constant 0 : i32
    return %c0_i32, %c0_i32_0 : i32, i32
  }
  func.func @transform_4(%arg0: i32) -> (i32, i32) {
    %c0_i32 = arith.constant 0 : i32
    %c0_i32_0 = arith.constant 0 : i32
    %c0_i32_1 = arith.constant 0 : i32
    return %c0_i32, %c0_i32_0 : i32, i32
  }
  func.func @transform_5(%arg0: i32) -> (i32, i32) {
    %c0_i32 = arith.constant 0 : i32
    %c0_i32_0 = arith.constant 0 : i32
    %c0_i32_1 = arith.constant 0 : i32
    return %c0_i32, %c0_i32_0 : i32, i32
  }
  func.func @transform_6(%arg0: i32) -> (i32, i32) {
    %c0_i32 = arith.constant 0 : i32
    %c0_i32_0 = arith.constant 0 : i32
    %c0_i32_1 = arith.constant 0 : i32
    return %c0_i32, %c0_i32_0 : i32, i32
  }
  func.func @transform_7(%arg0: i32) -> (i32, i32) {
    %c0_i32 = arith.constant 0 : i32
    %c0_i32_0 = arith.constant 0 : i32
    %c0_i32_1 = arith.constant 0 : i32
    return %c0_i32, %c0_i32_0 : i32, i32
  }
  func.func @transform_8(%arg0: i32) -> (i32, i32) {
    %c0_i32 = arith.constant 0 : i32
    %c0_i32_0 = arith.constant 0 : i32
    %c0_i32_1 = arith.constant 0 : i32
    return %c0_i32, %c0_i32_0 : i32, i32
  }
  func.func @transform_9(%arg0: i32) -> (i32, i32) {
    %c0_i32 = arith.constant 0 : i32
    %c0_i32_0 = arith.constant 0 : i32
    %c0_i32_1 = arith.constant 0 : i32
    return %c0_i32, %c0_i32_0 : i32, i32
  }
  func.func @transform_10(%arg0: i32) -> (i32, i32) {
    %c0_i32 = arith.constant 0 : i32
    %c0_i32_0 = arith.constant 0 : i32
    %c0_i32_1 = arith.constant 0 : i32
    return %c0_i32, %c0_i32_0 : i32, i32
  }
  func.func @transform_11(%arg0: i32) -> (i32, i32, i32) {
    %c0_i32 = arith.constant 0 : i32
    %c0_i32_0 = arith.constant 0 : i32
    %c0_i32_1 = arith.constant 0 : i32
    return %arg0, %c0_i32, %c0_i32_0 : i32, i32, i32
  }
}

</mosaic_0001>

<bundles_post_ra>
// kernel: tpu_custom_call.1
= control target key start
LH: loop header
LB: loop body
LE: loop exit
PB: predicated region body
PF: predicated region fallthrough
CT: control target
= control target key end

     0   :  { %s4404_s0 = inlined_call_operand.hbm [shape: f32[2,64,128], index: 0, kind: input, shape index: {}]   ;;  %s4405_s1 = inlined_call_operand.hbm [shape: f32[128,128], index: 1, kind: input, shape index: {}]   ;;  %s4406_s2 = inlined_call_operand.vmem [shape: f32[1,128], index: 2, kind: input, shape index: {}]   ;;  %s4407_s3 = inlined_call_operand.hbm [shape: f32[128,128], index: 3, kind: input, shape index: {}]   ;;  %s4408_s4 = inlined_call_operand.vmem [shape: f32[1,128], index: 4, kind: input, shape index: {}]   ;;  %s4409_s5 = inlined_call_operand.hbm [shape: f32[128,128], index: 5, kind: input, shape index: {}]   ;;  %s4410_s6 = inlined_call_operand.vmem [shape: f32[1,128], index: 6, kind: input, shape index: {}]   ;;  %s4411_s7 = inlined_call_operand.hbm [shape: f32[1152,128], index: 7, kind: input, shape index: {}]   ;;  %s4412_s8 = inlined_call_operand.hbm [shape: f32[64,1152], index: 8, kind: input, shape index: {}]   ;;  %s4413_s9 = inlined_call_operand.vmem [shape: f32[1,128], index: 9, kind: input, shape index: {}]   ;;  %s4414_s10 = inlined_call_operand.vmem [shape: f32[1,128], index: 10, kind: input, shape index: {}]   ;;  %s4415_s11 = inlined_call_operand.hbm [shape: f32[2,64,128], index: 11, kind: output, shape index: {}]  }
   0x1   :  { %4421 = sst [smem:[#allocation19_spill]] %s4405_s1 }
   0x2   :  { %4422 = sst [smem:[#allocation20_spill]] %s4413_s9 }
   0x3   :  { %4423 = sst [smem:[#allocation21_spill]] %s4414_s10 }
   0x4   :  { %4424 = sst [smem:[#allocation22_spill]] %s4415_s11 }
   0x5   :  { %16 = vsyncpa [#allocation3], 0 }
   0x6   :  { %18 = vsyncpa [#allocation3 + $0x1], 0 }
   0x7   :  { %19 = vsyncpa [#allocation6], 0 }
   0x8   :  { %20 = vsyncpa [#allocation9], 0 }
   0x9   :  { %21 = vsyncpa [#allocation12], 0 }
   0xa   :  { %22 = vsyncpa [#allocation4], 0 }
   0xb   :  { %24 = vsyncpa [#allocation4 + $0x1], 0  ;;  %s3616_s17 = smov 0   ;;  %s3618_s18 = smov 0  }
   0xc   :  { %s3620_s19 = smov 0   ;;  %s3622_s20 = smov 0  }
   0xd LB: > { %s3543_s21 = smov [#allocation5]   ;;  %s3637_s23 = sadd.s32 4294967295, %s3541_s20   ;;  %s3541_s20 = sphi %s3622_s20, %s4451_s20   ;;  %s3537_s19 = sphi %s3620_s19, %s4450_s19   ;;  %s3533_s18 = sphi %s3618_s18, %s4449_s18   ;;  %s3529_s17 = sphi %s3616_s17, %s4448_s17  }
   0xe   : > { %s309_s22 = sshll.u32 %s3543_s21, 4  ;;  %p2240_p0 = scmp.ge.s32.totalorder %s3541_s20, 1  ;;  %s3642_s22 = int_to_ptr.vmem [resolvable:$true] %s309_s22 }
   0xf   : > { %p4417_p1 = scmp.eq.s32.totalorder %s3637_s23, 0  ;;  %p297_p2 = scmp.lt.s32.totalorder %s3541_s20, 3 }
  0x10   : > { %s3544_s25 = smov [#allocation8]   ;;  %s3545_s28 = smov [#allocation7]  }
  0x11   : > { %p3644_p3 = pnand %p2240_p0, %p297_p2  ;;  %s341_s26 = sshll.u32 %s3544_s25, 4  ;;  %s3657_s26 = int_to_ptr.vmem [resolvable:$true] %s341_s26 }
  0x12   : > { %s325_s29 = sshll.u32 %s3545_s28, 4  ;;  %s4427_s1 = sld [smem:[#allocation19_spill]]  ;;  %s3659_s29 = int_to_ptr.vmem [resolvable:$true] %s325_s29 }
  0x13   : > { %s4425_s24 = scalar_select %p3644_p3, 1, 0 }
  0x14   : > { %p3174_p5 = pneg %p3644_p3 }
  0x16   : > { %p3653_p6 = pnand %p3174_p5, %p4417_p1 }
  0x18   : > { %s3293_s13 = scalar_lea.hbm %s4427_s1, 2048  ;;  %p3669_p8 = pneg %p3653_p6 }
  0x19   : > { %p3294_p7 = scmp.ne.s32.totalorder %s4427_s1, %s3293_s13  ;;  %p3300_p11 = scmp.lt.u32.totalorder %s3293_s13, %s4427_s1 }
  0x1b   : > { %p3296_p9 = pnand %p3669_p8, %p3294_p7 }
  0x1d   : > { %p3297_p10 = pneg %p3296_p9 }
  0x1f   : > { %p3302_p12 = pnand %p3300_p11, %p3297_p10 }
  0x21   : > { %3305 = shalt.err (!%p3302_p12)
}
  0x22   : > { %s3306_s28 = scalar_lea.vmem %s3642_s22, 2048  ;;  %p3314_p5 = scmp.lt.s32.totalorder %s3642_s22, %s3642_s22 }
  0x23   : > { %p3307_p13 = scmp.ne.s32.totalorder %s3642_s22, %s3306_s28  ;;  %p3315_p4 = scmp.lt.s32.totalorder %s3306_s28, %s3306_s28 }
  0x25   : > { %p3309_p0 = pnand %p3307_p13, %p3669_p8  ;;  %p3316_p7 = por %p3315_p4, %p3314_p5 }
  0x27   : > { %p3310_p2 = pneg %p3309_p0 }
  0x29   : > { %p3317_p9 = pnand %p3316_p7, %p3310_p2 }
  0x2b   : > { %3320 = shalt.err (!%p3317_p9)
}
  0x2c   : > { %s4419_s30 = smov 128   ;;  %s3547_s12 = smov 8  }
  0x2d   : > { %3177 = dma.hbm_to_vmem [thread:$0]  (!%p3653_p6), %s4427_s1, 2048, %s3642_s22, [#allocation6], %s4419_s30, %s4419_s30, %s3547_s12  }
  0x2e   : > { %s3321_s25 = scalar_lea.hbm %s4409_s5, 2048 }
  0x2f   : > { %p3322_p4 = scmp.ne.s32.totalorder %s4409_s5, %s3321_s25  ;;  %p3328_p12 = scmp.lt.u32.totalorder %s3321_s25, %s4409_s5 }
  0x31   : > { %p3324_p10 = pnand %p3322_p4, %p3669_p8 }
  0x33   : > { %p3325_p11 = pneg %p3324_p10 }
  0x35   : > { %p3330_p13 = pnand %p3328_p12, %p3325_p11 }
  0x37   : > { %3333 = shalt.err (!%p3330_p13)
}
  0x38   : > { %s3334_s22 = scalar_lea.vmem %s3657_s26, 2048  ;;  %p3342_p7 = scmp.lt.s32.totalorder %s3657_s26, %s3657_s26 }
  0x39   : > { %p3335_p0 = scmp.ne.s32.totalorder %s3657_s26, %s3334_s22  ;;  %p3343_p9 = scmp.lt.s32.totalorder %s3334_s22, %s3334_s22 }
  0x3b   : > { %p3337_p2 = pnand %p3335_p0, %p3669_p8  ;;  %p3344_p4 = por %p3343_p9, %p3342_p7 }
  0x3d   : > { %p3338_p5 = pneg %p3337_p2 }
  0x3f   : > { %p3345_p10 = pnand %p3344_p4, %p3338_p5 }
  0x41   : > { %3348 = shalt.err (!%p3345_p10)
}
  0x42   : > { %3183 = dma.hbm_to_vmem [thread:$0]  (!%p3653_p6), %s4409_s5, 2048, %s3657_s26, [#allocation9], %s4419_s30, %s4419_s30, %s3547_s12  }
  0x43   : > { %s3349_s14 = scalar_lea.hbm %s4407_s3, 2048 }
  0x44   : > { %p3350_p11 = scmp.ne.s32.totalorder %s4407_s3, %s3349_s14  ;;  %p3356_p0 = scmp.lt.u32.totalorder %s3349_s14, %s4407_s3 }
  0x46   : > { %p3352_p12 = pnand %p3350_p11, %p3669_p8 }
  0x48   : > { %p3353_p13 = pneg %p3352_p12 }
  0x4a   : > { %p3358_p2 = pnand %p3356_p0, %p3353_p13 }
  0x4c   : > { %3361 = shalt.err (!%p3358_p2)
}
  0x4d   : > { %s3362_s26 = scalar_lea.vmem %s3659_s29, 2048  ;;  %p3370_p4 = scmp.lt.s32.totalorder %s3659_s29, %s3659_s29 }
  0x4e   : > { %p3363_p5 = scmp.ne.s32.totalorder %s3659_s29, %s3362_s26  ;;  %p3371_p10 = scmp.lt.s32.totalorder %s3362_s26, %s3362_s26 }
  0x50   : > { %p3365_p7 = pnand %p3363_p5, %p3669_p8  ;;  %p3372_p11 = por %p3371_p10, %p3370_p4 }
  0x52   : > { %p3366_p9 = pneg %p3365_p7 }
  0x54   : > { %p3373_p12 = pnand %p3372_p11, %p3366_p9 }
  0x56   : > { %3376 = shalt.err (!%p3373_p12)
}
  0x57   : > { %3180 = dma.hbm_to_vmem [thread:$0]  (!%p3653_p6), %s4407_s3, 2048, %s3659_s29, [#allocation6], %s4419_s30, %s4419_s30, %s3547_s12  }
  0x58   : > { %s3548_s10 = smov [#allocation10]   ;;  %s3549_s13 = smov [#allocation11]  }
  0x59   : > { %s357_s11 = sshll.u32 %s3548_s10, 4  ;;  %s370_s14 = sshll.u32 %s3549_s13, 4  ;;  %s358_s11 = int_to_ptr.vmem [resolvable:$true] %s357_s11  ;;  %s371_s14 = int_to_ptr.vmem [resolvable:$true] %s370_s14 }
  0x5a   : > { %s3377_s25 = scalar_lea.hbm %s4411_s7, 18432 }
  0x5b   : > { %p3378_p13 = scmp.ne.s32.totalorder %s4411_s7, %s3377_s25  ;;  %p3384_p5 = scmp.lt.u32.totalorder %s3377_s25, %s4411_s7 }
  0x5d   : > { %p3380_p0 = pnand %p3378_p13, %p3669_p8 }
  0x5f   : > { %p3381_p2 = pneg %p3380_p0 }
  0x61   : > { %p3386_p7 = pnand %p3384_p5, %p3381_p2 }
  0x63   : > { %3389 = shalt.err (!%p3386_p7)
}
  0x64   : > { %s3390_s29 = scalar_lea.vmem %s358_s11, 18432  ;;  %p3398_p11 = scmp.lt.s32.totalorder %s358_s11, %s358_s11 }
  0x65   : > { %p3391_p9 = scmp.ne.s32.totalorder %s358_s11, %s3390_s29  ;;  %p3399_p12 = scmp.lt.s32.totalorder %s3390_s29, %s3390_s29 }
  0x67   : > { %p3393_p4 = pnand %p3391_p9, %p3669_p8  ;;  %p3400_p1 = por %p3399_p12, %p3398_p11 }
  0x69   : > { %p3394_p10 = pneg %p3393_p4 }
  0x6b   : > { %p3401_p3 = pnand %p3400_p1, %p3394_p10 }
  0x6d   : > { %3404 = shalt.err (!%p3401_p3)
}
  0x6e   : > { %3186 = dma.hbm_to_vmem [thread:$0]  (!%p3653_p6), %s4411_s7, 18432, %s358_s11, [#allocation9], %s4419_s30, %s4419_s30, %s3547_s12  }
  0x6f   : > { %s3405_s15 = scalar_lea.hbm %s4412_s8, 9216 }
  0x70   : > { %p3406_p1 = scmp.ne.s32.totalorder %s4412_s8, %s3405_s15  ;;  %p3412_p0 = scmp.lt.u32.totalorder %s3405_s15, %s4412_s8 }
  0x72   : > { %p3408_p3 = pnand %p3406_p1, %p3669_p8 }
  0x74   : > { %p3409_p13 = pneg %p3408_p3 }
  0x76   : > { %p3414_p2 = pnand %p3412_p0, %p3409_p13 }
  0x78   : > { %3417 = shalt.err (!%p3414_p2)
}
  0x79   : > { %s3418_s22 = scalar_lea.vmem %s371_s14, 9216  ;;  %p3426_p4 = scmp.lt.s32.totalorder %s371_s14, %s371_s14 }
  0x7a   : > { %p3419_p5 = scmp.ne.s32.totalorder %s371_s14, %s3418_s22  ;;  %p3427_p10 = scmp.lt.s32.totalorder %s3418_s22, %s3418_s22 }
  0x7c   : > { %p3421_p7 = pnand %p3419_p5, %p3669_p8  ;;  %p3428_p11 = por %p3427_p10, %p3426_p4 }
  0x7e   : > { %p3422_p9 = pneg %p3421_p7 }
  0x80   : > { %p3429_p12 = pnand %p3428_p11, %p3422_p9 }
  0x82   : > { %3432 = shalt.err (!%p3429_p12)
}
  0x83   : > { %s3550_s11 = smov 1152   ;;  %s3551_s16 = smov 72  }
  0x84   : > { %3189 = dma.hbm_to_vmem [thread:$0]  (!%p3653_p6), %s4412_s8, 9216, %s371_s14, [#allocation12], %s3550_s11, %s3550_s11, %s3551_s16  }
  0x85   : > { %s2239_s9 = sadd.s32 4294967294, %s3541_s20   ;;  %s3786_s10 = sadd.s32 1, %s3541_s20  }
  0x86   : > { %s37_s13 = sadd.s32 1, %s3537_s19  ;;  %s34_s15 = ssub.s32 %s3541_s20, %s3786_s10 }
  0x87   : > { %p44_p8 = scmp.ne.s32.totalorder %s3537_s19, %s3533_s18  ;;  %p35_p1 = scmp.eq.s32.totalorder %s34_s15, 0 }
  0x88   : > { %p45_p3 = scmp.eq.s32.totalorder %s3541_s20, 0  ;;  %p50_p13 = scmp.ne.s32.totalorder %s3533_s18, %s3529_s17 }
  0x89   : > { %p284_p0 = scmp.eq.s32.totalorder %s3637_s23, 1  ;;  %p4429_p5 = scmp.eq.s32.totalorder %s3637_s23, 0 }
  0x8a   : > { %s3798_s21 = scalar_select %p35_p1, %s3537_s19, %s37_s13  }
  0x8b   : > { %p46_p2 = por %p45_p3, %p44_p8  ;;  %p3802_p7 = por %p4429_p5, %p50_p13 }
  0x8c   : > { %p3806_p6 = por %p284_p0, %p44_p8  ;;  %p290_p9 = scmp.eq.s32.totalorder %s2239_s9, 1 }
  0x8d   : > { %p3203_p4 = scmp.lt.s32.totalorder %s3541_s20, 2  ;;  %s390_s25 = sand.u32 1, %s3537_s19  }
  0x8e   : > { %s4431_s14 = scalar_select %p3806_p6, 1, 0 }
  0x8f   : > { %p3812_p10 = por %p290_p9, %p50_p13  ;;  %s2247_s26 = sshll.u32 %s390_s25, 6 }
  0x90   : > { %s2276_s22 = sshll.u32 %s3541_s20, 10  ;;  %s394_s1 = scalar_lea.vmem [#allocation2], %s2247_s26 }
  0x91   : > { %s4432_s28 = scalar_select %p3812_p10, 1, 0 }
  0x92   : > { %s3820_s29 = scalar_lea.hbm %s4404_s0, %s2276_s22  ;;  %s401_s13 = sshll.u32 %s394_s1, 4  ;;  %s3826_s13 = int_to_ptr.vmem [resolvable:$true] %s401_s13 }
  0x93   : > { %p3822_p11 = pnand %p3203_p4, %p46_p2  ;;  %s3828_s15 = scalar_lea.sflag [#allocation3], %s390_s25 }
  0x94   : > { %s3433_s30 = scalar_lea.hbm %s3820_s29, 1024  ;;  %s3438_s11 = scalar_lea.hbm %s4404_s0, 2048 }
  0x95   : > { %p3434_p12 = scmp.ne.s32.totalorder %s3820_s29, %s3433_s30  ;;  %p3435_p8 = pneg %p3822_p11 }
  0x96   : > { %p3439_p13 = scmp.lt.u32.totalorder %s3820_s29, %s4404_s0  ;;  %p3440_p0 = scmp.lt.u32.totalorder %s3438_s11, %s3433_s30 }
  0x97   : > { %p3436_p1 = pnand %p3435_p8, %p3434_p12  ;;  %p3442_p5 = scmp.lt.u32.totalorder %s3433_s30, %s3820_s29 }
  0x98   : > { %p3441_p2 = por %p3440_p0, %p3439_p13 }
  0x99   : > { %p3437_p3 = pneg %p3436_p1 }
  0x9a   : > { %p3443_p9 = por %p3442_p5, %p3441_p2 }
  0x9c   : > { %p3444_p4 = pnand %p3443_p9, %p3437_p3 }
  0x9e   : > { %3447 = shalt.err (!%p3444_p4)
}
  0x9f   : > { %s3448_s25 = scalar_lea.vmem %s3826_s13, 1024  ;;  %s3552_s26 = smov [#allocation2]  }
  0xa0   : > { %p3449_p12 = scmp.ne.s32.totalorder %s3826_s13, %s3448_s25  ;;  %s3453_s22 = sshll.u32 %s3552_s26, 4  ;;  %s3454_s22 = int_to_ptr.vmem [resolvable:$false] %s3453_s22 }
  0xa1   : > { %s3455_s16 = scalar_lea.vmem %s3454_s22, 2048  ;;  %p3456_p6 = scmp.lt.s32.totalorder %s3826_s13, %s3454_s22 }
  0xa2   : > { %p3451_p1 = pnand %p3449_p12, %p3435_p8  ;;  %p3457_p13 = scmp.lt.s32.totalorder %s3455_s16, %s3448_s25 }
  0xa4   : > { %p3452_p10 = pneg %p3451_p1  ;;  %p3458_p0 = por %p3457_p13, %p3456_p6 }
  0xa6   : > { %p3459_p2 = pnand %p3458_p0, %p3452_p10 }
  0xa8   : > { %3462 = shalt.err (!%p3459_p2)
}
  0xa9   : > { %s4434_s30 = smov 128   ;;  %p4435_p8 = scmp.ne.s32.totalorder %s4425_s24, 0 }
  0xaa   : > { %3193 = dma.hbm_to_vmem [thread:$0]  (!%p3822_p11), %s3820_s29, 1024, %s3826_s13, %s3828_s15, %s4434_s30, %s4434_s30, %s3547_s12  }
  0xab   : > { %413 = sbr.rel (%p4435_p8) target bundleno = 1338 (0x53a), region = 64  ;;  %s3862_s11 = sand.u32 (!%p4435_p8), 1, %s3533_s18  }
  0xac   : > { %s2251_s1 = sshll.u32 (!%p4435_p8), %s3862_s11, 6  ;;  %s416_s25 = scalar_lea.sflag (!%p4435_p8), [#allocation3], %s3862_s11 }
  0xad   : > { %s3868_s9 = scalar_lea.vmem (!%p4435_p8), [#allocation2], %s2251_s1 }
  0xb2   : > { %3508 = dma.done.wait (%p3802_p7), %s416_s25, 1024  }
  0xb3   : > { %3510 = vsyncadd (%p3802_p7), %s416_s25, 4294966272  ;;  %p4436_p6 = scmp.eq.s32.totalorder %s3637_s23, 0 }
  0xb5   : > { %3512 = dma.done.wait (%p4436_p6), [#allocation6], 4096   ;;  %p4437_p10 = pmov %p4436_p6 }
  0xb6   : > { %p4438_p11 = pmov %p4436_p6 }
  0xb7   : > { %3514 = vsyncadd (%p4437_p10), [#allocation6], 4294963200 }
  0xb8   : > { %3516 = dma.done.wait (%p4438_p11), [#allocation9], 20480   ;;  %p4439_p3 = pmov %p4436_p6 }
  0xba   : > { %3518 = vsyncadd (%p4439_p3), [#allocation9], 4294946816  ;;  %p4440_p5 = pmov %p4439_p3 }
  0xbb   : > { %p4441_p9 = pmov %p4439_p3 }
  0xbc   : > { %3520 = dma.done.wait (%p4440_p5), [#allocation12], 9216  }
  0xbd   : > { %3522 = vsyncadd (%p4441_p9), [#allocation12], 4294958080  ;;  %v614_v0 = vld [vmem:[#allocation7] sm:$0xff]  ;;  %v615_v1 = vld [vmem:[#allocation7 + $0x8] sm:$0xff]  ;;  %vm975_vm0 = vcmask 523264   ;;  %s4442_s16 = sld [smem:[#allocation20_spill]] }
  0xbe   : > { %v616_v2 = vld [vmem:[#allocation7 + $0x10] sm:$0xff]  ;;  %v2894_v3 = vpack.c.bf16 %v615_v1, %v614_v0  ;;  %v617_v4 = vld [vmem:[#allocation7 + $0x18] sm:$0xff]  ;;  %v618_v6 = vld [vmem:[#allocation7 + $0x20] sm:$0xff]  ;;  %s4312_s24 = scalar_lea.vmem [#allocation13], %s2251_s1  ;;  %s2277_s1 = sshll.u32 %s3637_s23, 10 }
  0xbf   : > { %v2898_v5 = vpack.c.bf16 %v617_v4, %v616_v2  ;;  %v619_v7 = vld [vmem:[#allocation7 + $0x28] sm:$0xff]  ;;  %v620_v9 = vld [vmem:[#allocation7 + $0x30] sm:$0xff]  ;;  %v3887_v10 = vld [vmem:[%s3868_s9] sm:$0xff]  ;;  %s2118_s12 = sshll.u32 %s4312_s24, 4  ;;  %s4444_s13 = sld [smem:[#allocation22_spill]]  ;;  %s4359_s12 = int_to_ptr.vmem [resolvable:$true] %s2118_s12 }
  0xc0   : > { %2895 = vmatprep.subr.bf16.mxu1 %v2894_v3  ;;  %v2902_v8 = vpack.c.bf16 %v619_v7, %v618_v6  ;;  %v486_v11 = vld [vmem:[#allocation5] sm:$0xff]  ;;  %v621_v12 = vld [vmem:[#allocation7 + $0x38] sm:$0xff]  ;;  %2706 = vmatprep.mubr.f32.mxu1 %v3887_v10  ;;  %v487_v13 = vld [vmem:[#allocation5 + $0x8] sm:$0xff]  ;;  %s2105_s26 = scalar_lea.sflag [#allocation4], %s3862_s11  ;;  %s3463_s23 = scalar_lea.vmem %s4359_s12, 1024 }
  0xc1   : > { %2897 = vmatpush3.bf16.msra.mxu1 %v2894_v3  ;;  %v488_v14 = vld [vmem:[#allocation5 + $0x10] sm:$0xff]  ;;  %2662 = vmatprep.mubr.f32.mxu0 %v3887_v10  ;;  %v2862_v15 = vpack.c.bf16 %v487_v13, %v486_v11  ;;  %v489_v16 = vld [vmem:[#allocation5 + $0x18] sm:$0xff]  ;;  %v490_v18 = vld [vmem:[#allocation5 + $0x20] sm:$0xff]  ;;  %v2906_v20 = vpack.c.bf16 %v621_v12, %v620_v9  ;;  %p3464_p7 = scmp.ne.s32.totalorder %s4359_s12, %s3463_s23  ;;  %p4445_p4 = scmp.ne.s32.totalorder %s4431_s14, 0 }
  0xc2   : > { %2899 = vmatprep.subr.bf16.mxu1 %v2898_v5  ;;  %v2866_v17 = vpack.c.bf16 %v489_v16, %v488_v14  ;;  %v491_v19 = vld [vmem:[#allocation5 + $0x28] sm:$0xff]  ;;  %v622_v21 = vld [vmem:[#allocation7 + $0x40] sm:$0xff]  ;;  %v492_v24 = vld [vmem:[#allocation5 + $0x30] sm:$0xff]  ;;  %s3553_s22 = smov [#allocation13]  }
  0xc3   : > { %2863 = vmatprep.subr.bf16.mxu0 %v2862_v15  ;;  %v623_v22 = vld [vmem:[#allocation7 + $0x48] sm:$0xff]  ;;  %v2870_v23 = vpack.c.bf16 %v491_v19, %v490_v18  ;;  %v493_v25 = vld [vmem:[#allocation5 + $0x38] sm:$0xff]  ;;  %v624_v27 = vld [vmem:[#allocation7 + $0x50] sm:$0xff]  ;;  %p3465_p12 = pnand %p3464_p7, %p4445_p4 }
  0xc4   : > { %2865 = vmatpush3.bf16.msra.mxu0 %v2862_v15  ;;  %v2910_v26 = vpack.c.bf16 %v623_v22, %v622_v21  ;;  %v625_v28 = vld [vmem:[#allocation7 + $0x58] sm:$0xff]  ;;  %v2874_v29 = vpack.c.bf16 %v493_v25, %v492_v24  ;;  %v494_v30 = vld [vmem:[#allocation5 + $0x40] sm:$0xff]  ;;  %v495_v31 = vld [vmem:[#allocation5 + $0x48] sm:$0xff] }
  0xc5   : > { %2901 = vmatpush3.bf16.msra.mxu1 %v2898_v5  ;;  %2867 = vmatprep.subr.bf16.mxu0 %v2866_v17  ;;  %v2914_v32 = vpack.c.bf16 %v625_v28, %v624_v27  ;;  %v626_v33 = vld [vmem:[#allocation7 + $0x60] sm:$0xff]  ;;  %v627_v34 = vld [vmem:[#allocation7 + $0x68] sm:$0xff]  ;;  %v2878_v35 = vpack.c.bf16 %v495_v31, %v494_v30  ;;  %v496_v36 = vld [vmem:[#allocation5 + $0x50] sm:$0xff]  ;;  %s4357_s15 = scalar_lea.hbm %s4444_s13, %s2277_s1  ;;  %p3466_p1 = pneg %p3465_p12 }
  0xc6   : > { %2903 = vmatprep.subr.bf16.mxu1 %v2902_v8  ;;  %v497_v37 = vld [vmem:[#allocation5 + $0x58] sm:$0xff]  ;;  %v2918_v38 = vpack.c.bf16 %v627_v34, %v626_v33  ;;  %v628_v39 = vld [vmem:[#allocation7 + $0x70] sm:$0xff]  ;;  %v498_v42 = vld [vmem:[#allocation5 + $0x60] sm:$0xff] }
  0xc7   : > { %v629_v40 = vld [vmem:[#allocation7 + $0x78] sm:$0xff]  ;;  %v2882_v41 = vpack.c.bf16 %v497_v37, %v496_v36  ;;  %v499_v43 = vld [vmem:[#allocation5 + $0x68] sm:$0xff]  ;;  %v500_v46 = vld [vmem:[#allocation5 + $0x70] sm:$0xff] }
  0xc8   : > { %2869 = vmatpush3.bf16.msra.mxu0 %v2866_v17  ;;  %v2922_v44 = vpack.c.bf16 %v629_v40, %v628_v39  ;;  %v2886_v45 = vpack.c.bf16 %v499_v43, %v498_v42  ;;  %v501_v47 = vld [vmem:[#allocation5 + $0x78] sm:$0xff]  ;;  %v3892_v49 = vld [vmem:[%s3868_s9 + $0x8] sm:$0xff]  ;;  %v3895_v50 = vld [vmem:[%s3868_s9 + $0x10] sm:$0xff] }
  0xc9   : > { %2905 = vmatpush3.bf16.msra.mxu1 %v2902_v8  ;;  %2871 = vmatprep.subr.bf16.mxu0 %v2870_v23  ;;  %v2890_v48 = vpack.c.bf16 %v501_v47, %v500_v46  ;;  %v3900_v51 = vld [vmem:[%s3868_s9 + $0x18] sm:$0xff]  ;;  %v3903_v52 = vld [vmem:[%s3868_s9 + $0x20] sm:$0xff]  ;;  %v3908_v53 = vld [vmem:[%s3868_s9 + $0x28] sm:$0xff] }
  0xca   : > { %2907 = vmatprep.subr.bf16.mxu1 %v2906_v20  ;;  %v3911_v54 = vld [vmem:[%s3868_s9 + $0x30] sm:$0xff]  ;;  %v3918_v55 = vld [vmem:[%s3868_s9 + $0x38] sm:$0xff]  ;;  %v2259_v56 = vld [vmem:[%s4408_s4] ss:$0 sm:$0xff] }
  0xcb   : > { %v2258_v1 = vld [vmem:[%s4406_s2] ss:$0 sm:$0xff]  ;;  %v744_v33 = vld [vmem:[#allocation8 + $0x10] sm:$0xff]  ;;  %v753_v47 = vld [vmem:[#allocation8 + $0x58] sm:$0xff] }
  0xcc   : > { %2873 = vmatpush3.bf16.msra.mxu0 %v2870_v23  ;;  %v742_v31 = vld [vmem:[#allocation8] sm:$0xff]  ;;  %v748_v40 = vld [vmem:[#allocation8 + $0x30] sm:$0xff] }
  0xcd   : > { %2909 = vmatpush3.bf16.msra.mxu1 %v2906_v20  ;;  %2875 = vmatprep.subr.bf16.mxu0 %v2874_v29  ;;  %v746_v37 = vld [vmem:[#allocation8 + $0x20] sm:$0xff]  ;;  %v752_v46 = vld [vmem:[#allocation8 + $0x50] sm:$0xff] }
  0xce   : > { %2911 = vmatprep.subr.bf16.mxu1 %v2910_v26  ;;  %v750_v43 = vld [vmem:[#allocation8 + $0x40] sm:$0xff] }
  0xd0   : > { %2877 = vmatpush3.bf16.msra.mxu0 %v2874_v29 }
  0xd1   : > { %2913 = vmatpush3.bf16.msra.mxu1 %v2910_v26  ;;  %2879 = vmatprep.subr.bf16.mxu0 %v2878_v35 }
  0xd2   : > { %2915 = vmatprep.subr.bf16.mxu1 %v2914_v32 }
  0xd4   : > { %2881 = vmatpush3.bf16.msra.mxu0 %v2878_v35  ;;  %v745_v35 = vld [vmem:[#allocation8 + $0x18] sm:$0xff] }
  0xd5   : > { %2917 = vmatpush3.bf16.msra.mxu1 %v2914_v32  ;;  %2883 = vmatprep.subr.bf16.mxu0 %v2882_v41  ;;  %v743_v32 = vld [vmem:[#allocation8 + $0x8] sm:$0xff]  ;;  %v2930_v36 = vpack.c.bf16 %v745_v35, %v744_v33  ;;  %v1396_v33 = vld [vmem:[#allocation10 + $0xb8] sm:$0xff] }
  0xd6   : > { %2919 = vmatprep.subr.bf16.mxu1 %v2918_v38  ;;  %v2926_v34 = vpack.c.bf16 %v743_v32, %v742_v31  ;;  %v1378_v31 = vld [vmem:[#allocation10 + $0x28] sm:$0xff]  ;;  %v1395_v32 = vld [vmem:[#allocation10 + $0xb0] sm:$0xff] }
  0xd7   : > { %v3002_v35 = vpack.c.bf16 %v1396_v33, %v1395_v32 }
  0xd8   : > { %2885 = vmatpush3.bf16.msra.mxu0 %v2882_v41  ;;  %v749_v41 = vld [vmem:[#allocation8 + $0x38] sm:$0xff] }
  0xd9   : > { %2921 = vmatpush3.bf16.msra.mxu1 %v2918_v38  ;;  %2887 = vmatprep.subr.bf16.mxu0 %v2886_v45  ;;  %v747_v38 = vld [vmem:[#allocation8 + $0x28] sm:$0xff]  ;;  %v2938_v42 = vpack.c.bf16 %v749_v41, %v748_v40 }
  0xda   : > { %2923 = vmatprep.subr.bf16.mxu1 %v2922_v44  ;;  %v2934_v39 = vpack.c.bf16 %v747_v38, %v746_v37  ;;  %v1380_v37 = vld [vmem:[#allocation10 + $0x38] sm:$0xff] }
  0xdc   : > { %2889 = vmatpush3.bf16.msra.mxu0 %v2886_v45 }
  0xdd   : > { %2925 = vmatpush3.bf16.msra.mxu1 %v2922_v44  ;;  %2891 = vmatprep.subr.bf16.mxu0 %v2890_v48  ;;  %v751_v44 = vld [vmem:[#allocation8 + $0x48] sm:$0xff] }
  0xde   : > { %v2942_v45 = vpack.c.bf16 %v751_v44, %v750_v43 }
  0xe0   : > { %2707 = vmatmul.mubr.f32.vlgmr.msra.gmra.mrb[0].mxu1 %v3892_v49  ;;  %2893 = vmatpush3.bf16.msra.mxu0 %v2890_v48  ;;  %v2946_v48 = vpack.c.bf16 %v753_v47, %v752_v46 }
  0xe1   : > { %2709 = vmatprep.mubr.f32.mxu1 %v3895_v50  ;;  %2927 = vmatprep.subr.bf16.mxu0 %v2926_v34 }
  0xe3   : > { %2663 = vmatmul.mubr.f32.vlgmr.msra.gmra.mrb[0].mxu0 %v3892_v49 }
  0xe4   : > { %2710 = vmatmul.mubr.f32.gmra.mrb[2].mxu1 %v3900_v51  ;;  %2665 = vmatprep.mubr.f32.mxu0 %v3895_v50 }
  0xe5   : > { %2712 = vmatprep.mubr.f32.mxu1 %v3903_v52  ;;  %2929 = vmatpush3.bf16.msra.mxu0 %v2926_v34 }
  0xe6   : > { %2931 = vmatprep.subr.bf16.mxu0 %v2930_v36 }
  0xe7   : > { %2666 = vmatmul.mubr.f32.gmra.mrb[2].mxu0 %v3900_v51 }
  0xe8   : > { %2713 = vmatmul.mubr.f32.gmra.mrb[4].mxu1 %v3908_v53  ;;  %2668 = vmatprep.mubr.f32.mxu0 %v3903_v52 }
  0xe9   : > { %2715 = vmatprep.mubr.f32.mxu1 %v3911_v54  ;;  %2933 = vmatpush3.bf16.msra.mxu0 %v2930_v36  ;;  %v1379_v36 = vld [vmem:[#allocation10 + $0x30] sm:$0xff] }
  0xea   : > { %2935 = vmatprep.subr.bf16.mxu0 %v2934_v39  ;;  %v3004_v38 = vpack.c.bf16 %v1380_v37, %v1379_v36  ;;  %v1381_v36 = vld [vmem:[#allocation10 + $0x40] sm:$0xff] }
  0xeb   : > { %2669 = vmatmul.mubr.f32.gmra.mrb[4].mxu0 %v3908_v53 }
  0xec   : > { %2716 = vmatmul.mubr.f32.gmra.mrb[6].mxu1 %v3918_v55  ;;  %2671 = vmatprep.mubr.f32.mxu0 %v3911_v54 }
  0xed   : > { %2937 = vmatpush3.bf16.msra.mxu0 %v2934_v39  ;;  %v3975_v39 = vld [vmem:[%s4410_s6] ss:$0 sm:$0xff] }
  0xee   : > { %2939 = vmatprep.subr.bf16.mxu0 %v2938_v42 }
  0xef   : > { %2672 = vmatmul.mubr.f32.gmra.mrb[6].mxu0 %v3918_v55 }
  0xf0   : > { %2750 = vmatprep.mubr.f32.mxu0 %v3887_v10 }
  0xf1   : > { %2941 = vmatpush3.bf16.msra.mxu0 %v2938_v42 }
  0xf2   : > { %2943 = vmatprep.subr.bf16.mxu0 %v2942_v45 }
  0xf5   : > { %2945 = vmatpush3.bf16.msra.mxu0 %v2942_v45 }
  0xf6   : > { %2947 = vmatprep.subr.bf16.mxu0 %v2946_v48 }
  0xf9   : > { %2949 = vmatpush3.bf16.msra.mxu0 %v2946_v48 }
 0x1b3   : > { %v2708_v57 = vpop.f32.mrb[0].mxu1 }
 0x1b4   : > { %v709_v58 = vadd.f32 %v2708_v57, %v2259_v56  ;;  %v703_v59 = vpop.f32.mrb[1].mxu1  ;;  %v755_v57 = vld [vmem:[#allocation8 + $0x68] sm:$0xff] }
 0x1b5   : > { %v704_v60 = vadd.f32 %v2259_v56, %v703_v59  ;;  %v756_v59 = vld [vmem:[#allocation8 + $0x70] sm:$0xff] }
 0x1b6   : > { %v2664_v3 = vpop.f32.mrb[0].mxu0 }
 0x1b7   : > { %v2958_v61 = vpack.c.bf16 %v709_v58, %v704_v60  ;;  %v2711_v62 = vpop.f32.mrb[2].mxu1  ;;  %v575_v4 = vpop.f32.mrb[1].mxu0  ;;  %v581_v25 = vadd.f32 %v2664_v3, %v2258_v1  ;;  %v757_v60 = vld [vmem:[#allocation8 + $0x78] sm:$0xff] }
 0x1b8   : > { %v719_v63 = vadd.f32 %v2711_v62, %v2259_v56  ;;  %v713_v0 = vpop.f32.mrb[3].mxu1  ;;  %v576_v7 = vadd.f32 %v2258_v1, %v575_v4 }
 0x1b9   : > { %2959 = vmatprep.subr.bf16.mxu1 %v2958_v61  ;;  %v714_v2 = vadd.f32 %v2259_v56, %v713_v0 }
 0x1ba   : > { %2961 = vmatpush3.bf16.xpose.msra.mxu1 %v2958_v61  ;;  %2778 = vmatprep.mubr.f32.mxu1 %v576_v7  ;;  %v2667_v12 = vpop.f32.mrb[2].mxu0  ;;  %v2954_v61 = vpack.c.bf16 %v757_v60, %v756_v59 }
 0x1bb   : > { %v2962_v5 = vpack.c.bf16 %v719_v63, %v714_v2  ;;  %v2714_v6 = vpop.f32.mrb[4].mxu1  ;;  %v585_v13 = vpop.f32.mrb[3].mxu0  ;;  %v591_v26 = vadd.f32 %v2667_v12, %v2258_v1 }
 0x1bc   : > { %v729_v8 = vadd.f32 %v2714_v6, %v2259_v56  ;;  %v723_v9 = vpop.f32.mrb[5].mxu1  ;;  %v586_v24 = vadd.f32 %v2258_v1, %v585_v13 }
 0x1bd   : > { %2963 = vmatprep.subr.bf16.mxu1 %v2962_v5  ;;  %v724_v11 = vadd.f32 %v2259_v56, %v723_v9 }
 0x1be   : > { %v2670_v19 = vpop.f32.mrb[4].mxu0 }
 0x1bf   : > { %v2966_v14 = vpack.c.bf16 %v729_v8, %v724_v11  ;;  %v2717_v15 = vpop.f32.mrb[6].mxu1  ;;  %v595_v20 = vpop.f32.mrb[5].mxu0  ;;  %v601_v28 = vadd.f32 %v2670_v19, %v2258_v1  ;;  %v1374_v19 = vld [vmem:[#allocation10 + $0x8] sm:$0xff] }
 0x1c0   : > { %v739_v16 = vadd.f32 %v2717_v15, %v2259_v56  ;;  %v733_v17 = vpop.f32.mrb[7].mxu1  ;;  %v596_v27 = vadd.f32 %v2258_v1, %v595_v20  ;;  %v1389_v15 = vld [vmem:[#allocation10 + $0x80] sm:$0xff]  ;;  %v1391_v20 = vld [vmem:[#allocation10 + $0x90] sm:$0xff] }
 0x1c1   : > { %v734_v18 = vadd.f32 %v2259_v56, %v733_v17  ;;  %v754_v56 = vld [vmem:[#allocation8 + $0x60] sm:$0xff] }
 0x1c2   : > { %2965 = vmatpush3.bf16.xpose.msra.mxu1 %v2962_v5  ;;  %v2673_v22 = vpop.f32.mrb[6].mxu0  ;;  %v2950_v58 = vpack.c.bf16 %v755_v57, %v754_v56  ;;  %v1373_v17 = vld [vmem:[#allocation10] sm:$0xff] }
 0x1c3   : > { %2967 = vmatprep.subr.bf16.mxu1 %v2966_v14  ;;  %v2970_v21 = vpack.c.bf16 %v739_v16, %v734_v18  ;;  %v605_v23 = vpop.f32.mrb[7].mxu0  ;;  %v611_v30 = vadd.f32 %v2673_v22, %v2258_v1  ;;  %v1390_v16 = vld [vmem:[#allocation10 + $0x88] sm:$0xff]  ;;  %v2992_v22 = vpack.c.bf16 %v1374_v19, %v1373_v17 }
 0x1c4   : > { %v606_v29 = vadd.f32 %v2258_v1, %v605_v23  ;;  %2951 = vmatprep.subr.bf16.mxu0 %v2950_v58  ;;  %v2990_v18 = vpack.c.bf16 %v1390_v16, %v1389_v15 }
 0x1c5   : > { %2953 = vmatpush3.bf16.msra.mxu0 %v2950_v58 }
 0x1c6   : > { %2955 = vmatprep.subr.bf16.mxu0 %v2954_v61 }
 0x1c9   : > { %2957 = vmatpush3.bf16.msra.mxu0 %v2954_v61 }
 0x1ca   : > { %2969 = vmatpush3.bf16.xpose.msra.mxu1 %v2966_v14 }
 0x1cb   : > { %2971 = vmatprep.subr.bf16.mxu1 %v2970_v21 }
 0x1cc   : > { %2751 = vmatmul.mubr.f32.vlgmr.msra.gmra.mrb[8].mxu0 %v3892_v49 }
 0x1cd   : > { %2753 = vmatprep.mubr.f32.mxu0 %v3895_v50 }
 0x1d0   : > { %2754 = vmatmul.mubr.f32.gmra.mrb[10].mxu0 %v3900_v51 }
 0x1d1   : > { %2756 = vmatprep.mubr.f32.mxu0 %v3903_v52 }
 0x1d2   : > { %2973 = vmatpush3.bf16.xpose.msra.mxu1 %v2970_v21  ;;  %v1392_v21 = vld [vmem:[#allocation10 + $0x98] sm:$0xff] }
 0x1d3   : > { %v2994_v23 = vpack.c.bf16 %v1392_v21, %v1391_v20  ;;  %2991 = vmatprep.subr.bf16.mxu1 %v2990_v18 }
 0x1d4   : > { %2757 = vmatmul.mubr.f32.gmra.mrb[12].mxu0 %v3908_v53 }
 0x1d5   : > { %2759 = vmatprep.mubr.f32.mxu0 %v3911_v54 }
 0x1d8   : > { %2760 = vmatmul.mubr.f32.gmra.mrb[14].mxu0 %v3918_v55 }
 0x1d9   : > { %2779 = vmatmul.mubr.f32.vlgmr.msra.gmra.mrb[8].mxu1 %v581_v25  ;;  %v1376_v25 = vld [vmem:[#allocation10 + $0x18] sm:$0xff] }
 0x1da   : > { %2781 = vmatprep.mubr.f32.mxu1 %v586_v24  ;;  %v1375_v24 = vld [vmem:[#allocation10 + $0x10] sm:$0xff]  ;;  %2993 = vmatpush3.bf16.msra.mxu1 %v2992_v22 }
 0x1db   : > { %2995 = vmatprep.subr.bf16.mxu1 %v2994_v23 }
 0x1dd   : > { %2782 = vmatmul.mubr.f32.gmra.mrb[10].mxu1 %v591_v26  ;;  %v1393_v26 = vld [vmem:[#allocation10 + $0xa0] sm:$0xff] }
 0x1de   : > { %2784 = vmatprep.mubr.f32.mxu1 %v596_v27  ;;  %v1394_v27 = vld [vmem:[#allocation10 + $0xa8] sm:$0xff] }
 0x1e1   : > { %2785 = vmatmul.mubr.f32.gmra.mrb[12].mxu1 %v601_v28  ;;  %v2996_v28 = vpack.c.bf16 %v1376_v25, %v1375_v24 }
 0x1e2   : > { %2787 = vmatprep.mubr.f32.mxu1 %v606_v29  ;;  %v2998_v29 = vpack.c.bf16 %v1394_v27, %v1393_v26 }
 0x1e3   : > { %2997 = vmatpush3.bf16.msra.mxu1 %v2996_v28 }
 0x1e4   : > { %2999 = vmatprep.subr.bf16.mxu1 %v2998_v29 }
 0x1e5   : > { %2788 = vmatmul.mubr.f32.gmra.mrb[14].mxu1 %v611_v30  ;;  %v1377_v30 = vld [vmem:[#allocation10 + $0x20] sm:$0xff] }
 0x1e6   : > { %v3000_v34 = vpack.c.bf16 %v1378_v31, %v1377_v30 }
 0x1e8   : > { %3001 = vmatpush3.bf16.msra.mxu1 %v3000_v34  ;;  %v1397_v34 = vld [vmem:[#allocation10 + $0xc0] sm:$0xff] }
 0x1e9   : > { %3003 = vmatprep.subr.bf16.mxu1 %v3002_v35  ;;  %v1398_v35 = vld [vmem:[#allocation10 + $0xc8] sm:$0xff] }
 0x1ec   : > { %3005 = vmatpush3.bf16.msra.mxu1 %v3004_v38 }
 0x29f   : > { %v2752_v40 = vpop.f32.mrb[8].mxu0 }
 0x2a0   : > { %v837_v41 = vadd.f32 %v2752_v40, %v3975_v39  ;;  %v831_v42 = vpop.f32.mrb[9].mxu0 }
 0x2a1   : > { %v832_v43 = vadd.f32 %v3975_v39, %v831_v42  ;;  %v1382_v42 = vld [vmem:[#allocation10 + $0x48] sm:$0xff] }
 0x2a3   : > { %v2974_v44 = vpack.c.bf16 %v837_v41, %v832_v43  ;;  %v2755_v45 = vpop.f32.mrb[10].mxu0  ;;  %v3006_v41 = vpack.c.bf16 %v1398_v35, %v1397_v34  ;;  %v1437_v35 = vld [vmem:[#allocation10 + $0x200] sm:$0xff] }
 0x2a4   : > { %v847_v46 = vadd.f32 %v2755_v45, %v3975_v39  ;;  %v841_v47 = vpop.f32.mrb[11].mxu0 }
 0x2a5   : > { %v842_v48 = vadd.f32 %v3975_v39, %v841_v47  ;;  %2975 = vmatprep.subr.bf16.mxu0 %v2974_v44  ;;  %3007 = vmatprep.subr.bf16.mxu1 %v3006_v41  ;;  %v1400_v47 = vld [vmem:[#allocation10 + $0xd8] sm:$0xff] }
 0x2a6   : > { %2977 = vmatpush3.bf16.msra.mxu0 %v2974_v44  ;;  %v3008_v44 = vpack.c.bf16 %v1382_v42, %v1381_v36  ;;  %v1438_v36 = vld [vmem:[#allocation10 + $0x208] sm:$0xff] }
 0x2a7   : > { %v2978_v58 = vpack.c.bf16 %v847_v46, %v842_v48  ;;  %v2758_v33 = vpop.f32.mrb[12].mxu0  ;;  %v1399_v46 = vld [vmem:[#allocation10 + $0xd0] sm:$0xff] }
 0x2a8   : > { %v857_v38 = vadd.f32 %v2758_v33, %v3975_v39  ;;  %v851_v40 = vpop.f32.mrb[13].mxu0  ;;  %3009 = vmatpush3.bf16.msra.mxu1 %v3008_v44  ;;  %v1455_v44 = vld [vmem:[#allocation10 + $0x290] sm:$0xff] }
 0x2a9   : > { %2979 = vmatprep.subr.bf16.mxu0 %v2978_v58  ;;  %v852_v43 = vadd.f32 %v3975_v39, %v851_v40  ;;  %v1239_v40 = vld [vmem:[#allocation11 + $0x50] sm:$0xff] }
 0x2aa   : > { %2981 = vmatpush3.bf16.msra.mxu0 %v2978_v58  ;;  %v1384_v58 = vld [vmem:[#allocation10 + $0x58] sm:$0xff]  ;;  %v1311_v41 = vmul.f32 %v1239_v40, %v3887_v10  ;;  %v1446_v40 = vld [vmem:[#allocation10 + $0x248] sm:$0xff] }
 0x2ab   : > { %v2982_v45 = vpack.c.bf16 %v857_v38, %v852_v43  ;;  %v2761_v48 = vpop.f32.mrb[14].mxu0  ;;  %v1193_v38 = vrot.slane %v3887_v10, 7  ;;  %v1238_v43 = vld [vmem:[#allocation11 + $0x48] sm:$0xff] }
 0x2ac   : > { %v3940_v62 = vpop.f32.mrb[8].mxu1 }
 0x2ad   : > { %v3942_v63 = vpop.f32.mrb[9].mxu1  ;;  %v979_v3 = vsel %vm975_vm0, %v3940_v62, -inf  ;;  %2983 = vmatprep.subr.bf16.mxu0 %v2982_v45 }
 0x2ae   : > { %v976_v0 = vsel %vm975_vm0, %v3942_v63, -inf  ;;  %2985 = vmatpush3.bf16.msra.mxu0 %v2982_v45  ;;  %v1456_v45 = vld [vmem:[#allocation10 + $0x298] sm:$0xff] }
 0x2af   : > { %977 = vmax.xlane.f32.xlu0 %v976_v0 }
 0x2b0   : > { %v3946_v1 = vpop.f32.mrb[10].mxu1 }
 0x2b1   : > { %v3948_v2 = vpop.f32.mrb[11].mxu1  ;;  %v985_v6 = vsel %vm975_vm0, %v3946_v1, -inf }
 0x2b2   : > { %v982_v4 = vsel %vm975_vm0, %v3948_v2, -inf }
 0x2b3   : > { %980 = vmax.xlane.f32.xlu0 %v979_v3  ;;  %983 = vmax.xlane.f32.xlu1 %v982_v4 }
 0x2b4   : > { %v3954_v5 = vpop.f32.mrb[12].mxu1 }
 0x2b5   : > { %v3958_v7 = vpop.f32.mrb[13].mxu1  ;;  %v991_v11 = vsel %vm975_vm0, %v3954_v5, -inf }
 0x2b6   : > { %v988_v8 = vsel %vm975_vm0, %v3958_v7, -inf }
 0x2b7   : > { %986 = vmax.xlane.f32.xlu1 %v985_v6  ;;  %989 = vmax.xlane.f32.xlu0 %v988_v8 }
 0x2b8   : > { %v3962_v9 = vpop.f32.mrb[14].mxu1 }
 0x2b9   : > { %v3966_v12 = vpop.f32.mrb[15].mxu1  ;;  %v997_v14 = vsel %vm975_vm0, %v3962_v9, -inf }
 0x2ba   : > { %v994_v13 = vsel %vm975_vm0, %v3966_v12, -inf }
 0x2bb   : > { %992 = vmax.xlane.f32.xlu1 %v991_v11  ;;  %995 = vmax.xlane.f32.xlu0 %v994_v13 }
 0x2bf   : > { %998 = vmax.xlane.f32.xlu1 %v997_v14 }
 0x33c   : > { %v978_v56 = vpop.xlane.xlu0 %977 }
 0x33d   : > { %v1000_v57 = vsub.f32 %v3942_v63, %v978_v56  ;;  %v3010_v56 = vpack.c.bf16 %v1400_v47, %v1399_v46  ;;  %v3058_v47 = vpack.c.bf16 %v1456_v45, %v1455_v44  ;;  %v1275_v44 = vld [vmem:[#allocation11 + $0x170] sm:$0xff] }
 0x33e   : > { %v1347_v45 = vmul.f32 %v1275_v44, %v3903_v52  ;;  %v1501_v44 = vld [vmem:[#allocation10 + $0x400] sm:$0xff] }
 0x33f   : > { %v1008_v59 = vmul.f32 1.442695, %v1000_v57  ;;  %v1383_v57 = vld [vmem:[#allocation10 + $0x50] sm:$0xff]  ;;  %3011 = vmatprep.subr.bf16.mxu1 %v3010_v56  ;;  %v1440_v56 = vld [vmem:[#allocation10 + $0x218] sm:$0xff] }
 0x340   : > { %v981_v60 = vpop.xlane.xlu0 %980  ;;  %v984_v61 = vpop.xlane.xlu1 %983 }
 0x341   : > { %3253 = vpow2.f32 %v1008_v59  ;;  %v1001_v0 = vsub.f32 %v3940_v62, %v981_v60  ;;  %v1002_v3 = vsub.f32 %v3948_v2, %v984_v61  ;;  %v861_v59 = vpop.f32.mrb[15].mxu0  ;;  %v3012_v60 = vpack.c.bf16 %v1384_v58, %v1383_v57 }
 0x342   : > { %v867_v61 = vadd.f32 %v2761_v48, %v3975_v39  ;;  %v1439_v48 = vld [vmem:[#allocation10 + $0x210] sm:$0xff]  ;;  %v1194_v58 = vrot.slane %v3892_v49, 7 }
 0x343   : > { %v1010_v4 = vmul.f32 1.442695, %v1001_v0  ;;  %v1012_v6 = vmul.f32 1.442695, %v1002_v3  ;;  %v862_v0 = vadd.f32 %v3975_v39, %v861_v59  ;;  %3013 = vmatpush3.bf16.msra.mxu1 %v3012_v60  ;;  %v1401_v3 = vld [vmem:[#allocation10 + $0xe0] sm:$0xff]  ;;  %v1388_v39 = vld [vmem:[#allocation10 + $0x78] sm:$0xff]  ;;  %v3060_v57 = vpack.c.bf16 %v1440_v56, %v1439_v48 }
 0x344   : > { %v987_v8 = vpop.xlane.xlu1 %986  ;;  %v990_v11 = vpop.xlane.xlu0 %989  ;;  %v1248_v59 = vld [vmem:[#allocation11 + $0x98] sm:$0xff]  ;;  %v1463_v48 = vld [vmem:[#allocation10 + $0x2d0] sm:$0xff] }
 0x345   : > { %3255 = vpow2.f32 %v1010_v4  ;;  %v1003_v13 = vsub.f32 %v3946_v1, %v987_v8  ;;  %v1004_v63 = vsub.f32 %v3958_v7, %v990_v11  ;;  %v1402_v4 = vld [vmem:[#allocation10 + $0xe8] sm:$0xff]  ;;  %v1385_v11 = vld [vmem:[#allocation10 + $0x60] sm:$0xff]  ;;  %v1320_v60 = vmul.f32 %v1248_v59, %v3892_v49  ;;  %v1464_v56 = vld [vmem:[#allocation10 + $0x2d8] sm:$0xff] }
 0x346   : > { %3257 = vpow2.f32 %v1012_v6  ;;  %v2986_v6 = vpack.c.bf16 %v867_v61, %v862_v0  ;;  %v3014_v8 = vpack.c.bf16 %v1402_v4, %v1401_v3  ;;  %v1247_v0 = vld [vmem:[#allocation11 + $0x90] sm:$0xff]  ;;  %v1457_v3 = vld [vmem:[#allocation10 + $0x2a0] sm:$0xff]  ;;  %v1458_v4 = vld [vmem:[#allocation10 + $0x2a8] sm:$0xff] }
 0x347   : > { %v1014_v14 = vmul.f32 1.442695, %v1003_v13  ;;  %v1016_v15 = vmul.f32 1.442695, %v1004_v63  ;;  %v1386_v13 = vld [vmem:[#allocation10 + $0x68] sm:$0xff]  ;;  %v1447_v59 = vld [vmem:[#allocation10 + $0x250] sm:$0xff] }
 0x348   : > { %v993_v16 = vpop.xlane.xlu1 %992  ;;  %v996_v17 = vpop.xlane.xlu0 %995  ;;  %v3016_v63 = vpack.c.bf16 %v1386_v13, %v1385_v11  ;;  %2987 = vmatprep.subr.bf16.mxu0 %v2986_v6  ;;  %3015 = vmatprep.subr.bf16.mxu1 %v3014_v8  ;;  %v3062_v8 = vpack.c.bf16 %v1458_v4, %v1457_v3  ;;  %v1441_v11 = vld [vmem:[#allocation10 + $0x220] sm:$0xff]  ;;  %v1442_v13 = vld [vmem:[#allocation10 + $0x228] sm:$0xff]  ;;  %v1198_v3 = vrot.slane %v3908_v53, 7  ;;  %v1284_v4 = vld [vmem:[#allocation11 + $0x1b8] sm:$0xff] }
 0x349   : > { %3259 = vpow2.f32 %v1014_v14  ;;  %v1005_v18 = vsub.f32 %v3954_v5, %v993_v16  ;;  %v1006_v62 = vsub.f32 %v3966_v12, %v996_v17  ;;  %v1201_v14 = vlaneseq  ;;  %2989 = vmatpush3.bf16.msra.mxu0 %v2986_v6  ;;  %v1404_v16 = vld [vmem:[#allocation10 + $0xf8] sm:$0xff] }
 0x34a   : > { %3261 = vpow2.f32 %v1016_v15  ;;  %3017 = vmatpush3.bf16.msra.mxu1 %v3016_v63  ;;  %v1403_v15 = vld [vmem:[#allocation10 + $0xf0] sm:$0xff]  ;;  %v3064_v63 = vpack.c.bf16 %v1442_v13, %v1441_v11  ;;  %v1465_v13 = vld [vmem:[#allocation10 + $0x2e0] sm:$0xff] }
 0x34b   : > { %v3988_v2 = vpop.eup %3253  ;;  %v1018_v19 = vmul.f32 1.442695, %v1005_v18  ;;  %v1020_v20 = vmul.f32 1.442695, %v1006_v62  ;;  %v3018_v17 = vpack.c.bf16 %v1404_v16, %v1403_v15  ;;  %v1387_v18 = vld [vmem:[#allocation10 + $0x70] sm:$0xff]  ;;  %v4025_v62 = vshrl.u32 %v1201_v14, 7 }
 0x34c   : > { %v999_v21 = vpop.xlane.xlu1 %998  ;;  %v1024_v1 = vsel %vm975_vm0, %v3988_v2, 0.0  ;;  %v1195_v14 = vrot.slane %v3895_v50, 7  ;;  %v1257_v15 = vld [vmem:[#allocation11 + $0xe0] sm:$0xff]  ;;  %v1283_v11 = vld [vmem:[#allocation11 + $0x1b0] sm:$0xff] }
 0x34d   : > { %3263 = vpow2.f32 %v1018_v19  ;;  %v1007_v7 = vsub.f32 %v3962_v9, %v999_v21  ;;  %1025 = vadd.xlane.f32.xlu0 %v1024_v1  ;;  %v3020_v19 = vpack.c.bf16 %v1388_v39, %v1387_v18  ;;  %v1422_v21 = vld [vmem:[#allocation10 + $0x188] sm:$0xff]  ;;  %v1199_v1 = vrot.slane %v3911_v54, 7  ;;  %3019 = vmatprep.subr.bf16.mxu1 %v3018_v17  ;;  %v1256_v18 = vld [vmem:[#allocation11 + $0xd8] sm:$0xff]  ;;  %v1459_v39 = vld [vmem:[#allocation10 + $0x2b0] sm:$0xff] }
 0x34e   : > { %3265 = vpow2.f32 %v1020_v20  ;;  %v1421_v20 = vld [vmem:[#allocation10 + $0x180] sm:$0xff]  ;;  %vm1203_vm1 = vcmp.lt.s32.totalorder %v4025_v62, 1  ;;  %v1329_v16 = vmul.f32 %v1257_v15, %v3895_v50  ;;  %vm1220_vm2 = vcmp.lt.s32.totalorder %v4025_v62, 7  ;;  %v1246_v62 = vld [vmem:[#allocation11 + $0x88] sm:$0xff] }
 0x34f   : > { %v3993_v22 = vpop.eup %3255  ;;  %v1022_v23 = vmul.f32 1.442695, %v1007_v7  ;;  %v1200_v7 = vrot.slane %v3918_v55, 7  ;;  %3021 = vmatpush3.bf16.msra.mxu1 %v3020_v19  ;;  %v4049_v61 = vsel %vm1203_vm1, %v1193_v38, %v1194_v58  ;;  %v4056_v17 = vsel %vm1203_vm1, %v1194_v58, %v1195_v14  ;;  %v1460_v19 = vld [vmem:[#allocation10 + $0x2b8] sm:$0xff] }
 0x350   : > { %v3995_v5 = vpop.eup %3257  ;;  %v1027_v12 = vsel %vm975_vm0, %v3993_v22, 0.0  ;;  %v1319_v6 = vmul.f32 %v1247_v0, %v4049_v61  ;;  %v3074_v58 = vpack.c.bf16 %v1464_v56, %v1463_v48  ;;  %v1243_v48 = vld [vmem:[#allocation11 + $0x70] sm:$0xff] }
 0x351   : > { %3267 = vpow2.f32 %v1022_v23  ;;  %1028 = vadd.xlane.f32.xlu1 %v1027_v12  ;;  %v1030_v24 = vsel %vm975_vm0, %v3995_v5, 0.0  ;;  %v3022_v23 = vpack.c.bf16 %v1422_v21, %v1421_v20  ;;  %v1230_v12 = vld [vmem:[#allocation11 + $0x8] sm:$0xff]  ;;  %v4042_v42 = vsel %vm1203_vm1, %v1200_v7, %v1193_v38  ;;  %v1445_v38 = vld [vmem:[#allocation10 + $0x240] sm:$0xff] }
 0x352   : > { %1031 = vadd.xlane.f32.xlu0 %v1030_v24  ;;  %v1302_v24 = vmul.f32 %v1230_v12, %v3918_v55  ;;  %v1310_v46 = vmul.f32 %v1238_v43, %v4042_v42  ;;  %v1328_v20 = vmul.f32 %v1256_v18, %v4056_v17  ;;  %v3066_v21 = vpack.c.bf16 %v1460_v19, %v1459_v39  ;;  %v1450_v18 = vld [vmem:[#allocation10 + $0x268] sm:$0xff]  ;;  %v1293_v19 = vld [vmem:[#allocation11 + $0x200] sm:$0xff] }
 0x353   : > { %v4001_v25 = vpop.eup %3259  ;;  %3023 = vmatprep.subr.bf16.mxu0 %v3022_v23  ;;  %v1444_v23 = vld [vmem:[#allocation10 + $0x238] sm:$0xff]  ;;  %v1197_v43 = vrot.slane %v3903_v52, 7 }
 0x354   : > { %v4003_v26 = vpop.eup %3261  ;;  %v1033_v9 = vsel %vm975_vm0, %v4001_v25, 0.0  ;;  %1581 = vmatprep.mubr.f32.mxu1 %v1302_v24  ;;  %v1196_v24 = vrot.slane %v3900_v51, 7 }
 0x355   : > { %1034 = vadd.xlane.f32.xlu1 %v1033_v9  ;;  %v1036_v27 = vsel %vm975_vm0, %v4003_v26, 0.0  ;;  %v4035_v9 = vsel %vm1203_vm1, %v1199_v1, %v1200_v7  ;;  %v1443_v7 = vld [vmem:[#allocation10 + $0x230] sm:$0xff] }
 0x356   : > { %1037 = vadd.xlane.f32.xlu0 %v1036_v27  ;;  %v1229_v27 = vld [vmem:[#allocation11] sm:$0xff]  ;;  %v3068_v12 = vpack.c.bf16 %v1444_v23, %v1443_v7  ;;  %v1292_v7 = vld [vmem:[#allocation11 + $0x1f8] sm:$0xff]  ;;  %v1467_v23 = vld [vmem:[#allocation10 + $0x2f0] sm:$0xff] }
 0x357   : > { %v4009_v28 = vpop.eup %3263  ;;  %v1301_v33 = vmul.f32 %v1229_v27, %v4035_v9  ;;  %v1266_v27 = vld [vmem:[#allocation11 + $0x128] sm:$0xff] }
 0x358   : > { %v4011_v29 = vpop.eup %3265  ;;  %v1039_v30 = vsel %vm975_vm0, %v4009_v28, 0.0 }
 0x359   : > { %1040 = vadd.xlane.f32.xlu1 %v1039_v30  ;;  %v1042_v31 = vsel %vm975_vm0, %v4011_v29, 0.0  ;;  %v1453_v30 = vld [vmem:[#allocation10 + $0x280] sm:$0xff]  ;;  %1582 = vmatmul.mubr.f32.vlgmr.msra.gmra.mrb[16].mxu1 %v1301_v33 }
 0x35a   : > { %1043 = vadd.xlane.f32.xlu0 %v1042_v31  ;;  %v1454_v31 = vld [vmem:[#allocation10 + $0x288] sm:$0xff]  ;;  %1586 = vmatprep.mubr.f32.mxu1 %v1311_v41  ;;  %v1265_v33 = vld [vmem:[#allocation11 + $0x120] sm:$0xff]  ;;  %v3072_v41 = vpack.c.bf16 %v1446_v40, %v1445_v38 }
 0x35b   : > { %v4017_v32 = vpop.eup %3267  ;;  %v3054_v34 = vpack.c.bf16 %v1454_v31, %v1453_v30  ;;  %v1338_v30 = vmul.f32 %v1266_v27, %v3900_v51  ;;  %v4063_v31 = vsel %vm1203_vm1, %v1195_v14, %v1196_v24  ;;  %v1233_v38 = vld [vmem:[#allocation11 + $0x20] sm:$0xff] }
 0x35c   : > { %v1045_v37 = vsel %vm975_vm0, %v4017_v32, 0.0 }
 0x35d   : > { %1046 = vadd.xlane.f32.xlu1 %v1045_v37  ;;  %v3056_v37 = vpack.c.bf16 %v1438_v36, %v1437_v35  ;;  %3055 = vmatprep.subr.bf16.mxu1 %v3054_v34  ;;  %v1461_v34 = vld [vmem:[#allocation10 + $0x2c0] sm:$0xff]  ;;  %v1462_v35 = vld [vmem:[#allocation10 + $0x2c8] sm:$0xff]  ;;  %v1337_v36 = vmul.f32 %v1265_v33, %v4063_v31  ;;  %v1451_v33 = vld [vmem:[#allocation10 + $0x270] sm:$0xff] }
 0x35e   : > { %1587 = vmatmul.mubr.f32.gmra.mrb[18].mxu1 %v1310_v46  ;;  %v4070_v46 = vsel %vm1203_vm1, %v1196_v24, %v1197_v43  ;;  %v1212_v24 = vrot.slane %v3887_v10, 1 }
 0x35f   : > { %3057 = vmatpush3.bf16.msra.mxu1 %v3056_v37  ;;  %1591 = vmatprep.mubr.f32.mxu1 %v1320_v60  ;;  %v3070_v37 = vpack.c.bf16 %v1462_v35, %v1461_v34  ;;  %v1448_v60 = vld [vmem:[#allocation10 + $0x258] sm:$0xff] }
 0x360   : > { %3059 = vmatprep.subr.bf16.mxu1 %v3058_v47  ;;  %v1274_v47 = vld [vmem:[#allocation11 + $0x168] sm:$0xff]  ;;  %v3076_v0 = vpack.c.bf16 %v1448_v60, %v1447_v59  ;;  %v1452_v34 = vld [vmem:[#allocation10 + $0x278] sm:$0xff]  ;;  %v1215_v60 = vrot.slane %v3900_v51, 1 }
 0x361   : > { %v3084_v35 = vpack.c.bf16 %v1452_v34, %v1451_v33  ;;  %v1270_v33 = vld [vmem:[#allocation11 + $0x148] sm:$0xff] }
 0x362   : > { %1592 = vmatmul.mubr.f32.gmra.mrb[20].mxu1 %v1319_v6  ;;  %v1356_v6 = vmul.f32 %v1284_v4, %v3908_v53 }
 0x363   : > { %3061 = vmatpush3.bf16.msra.mxu1 %v3060_v57  ;;  %1596 = vmatprep.mubr.f32.mxu1 %v1329_v16  ;;  %v1346_v57 = vmul.f32 %v1274_v47, %v4070_v46  ;;  %v1449_v16 = vld [vmem:[#allocation10 + $0x260] sm:$0xff] }
 0x364   : > { %3063 = vmatprep.subr.bf16.mxu1 %v3062_v8  ;;  %v4077_v8 = vsel %vm1203_vm1, %v1197_v43, %v1198_v3  ;;  %v3080_v39 = vpack.c.bf16 %v1450_v18, %v1449_v16  ;;  %v1214_v43 = vrot.slane %v3895_v50, 1  ;;  %v1506_v16 = vld [vmem:[#allocation10 + $0x428] sm:$0xff] }
 0x365   : > { %v1355_v14 = vmul.f32 %v1283_v11, %v4077_v8 }
 0x366   : > { %1597 = vmatmul.mubr.f32.gmra.mrb[22].mxu1 %v1328_v20  ;;  %v1365_v20 = vmul.f32 %v1293_v19, %v3911_v54  ;;  %v4109_v4 = vsel %vm1220_vm2, %v1214_v43, %v1215_v60 }
 0x367   : > { %3065 = vmatpush3.bf16.msra.mxu1 %v3064_v63  ;;  %1601 = vmatprep.mubr.f32.mxu1 %v1338_v30  ;;  %v1466_v63 = vld [vmem:[#allocation10 + $0x2e8] sm:$0xff] }
 0x368   : > { %3067 = vmatprep.subr.bf16.mxu1 %v3066_v21  ;;  %v3078_v15 = vpack.c.bf16 %v1466_v63, %v1465_v13  ;;  %v4085_v21 = vsel %vm1203_vm1, %v1198_v3, %v1199_v1  ;;  %v1234_v1 = vld [vmem:[#allocation11 + $0x28] sm:$0xff]  ;;  %v1504_v3 = vld [vmem:[#allocation10 + $0x418] sm:$0xff]  ;;  %v1251_v63 = vld [vmem:[#allocation11 + $0xb0] sm:$0xff] }
 0x369   : > { %v1364_v27 = vmul.f32 %v1292_v7, %v4085_v21  ;;  %v1260_v7 = vld [vmem:[#allocation11 + $0xf8] sm:$0xff] }
 0x36a   : > { %1602 = vmatmul.mubr.f32.gmra.mrb[24].mxu1 %v1337_v36  ;;  %v1213_v36 = vrot.slane %v3892_v49, 1 }
 0x36b   : > { %3069 = vmatpush3.bf16.msra.mxu1 %v3068_v12  ;;  %1606 = vmatprep.mubr.f32.mxu1 %v1347_v45  ;;  %v1468_v12 = vld [vmem:[#allocation10 + $0x2f8] sm:$0xff]  ;;  %v1502_v45 = vld [vmem:[#allocation10 + $0x408] sm:$0xff] }
 0x36c   : > { %3071 = vmatprep.subr.bf16.mxu1 %v3070_v37  ;;  %v3082_v30 = vpack.c.bf16 %v1468_v12, %v1467_v23  ;;  %v4095_v37 = vsel %vm1220_vm2, %v1212_v24, %v1213_v36  ;;  %v4102_v47 = vsel %vm1220_vm2, %v1213_v36, %v1214_v43  ;;  %v3118_v56 = vpack.c.bf16 %v1502_v45, %v1501_v44  ;;  %v1507_v12 = vld [vmem:[#allocation10 + $0x430] sm:$0xff]  ;;  %v1269_v36 = vld [vmem:[#allocation11 + $0x140] sm:$0xff] }
 0x36d   : > { %v1306_v40 = vmul.f32 %v1234_v1, %v4095_v37  ;;  %v1332_v23 = vmul.f32 %v1260_v7, %v3900_v51  ;;  %v1341_v1 = vmul.f32 %v1269_v36, %v3903_v52  ;;  %v1218_v51 = vrot.slane %v3911_v54, 1  ;;  %v1279_v43 = vld [vmem:[#allocation11 + $0x190] sm:$0xff] }
 0x36e   : > { %1607 = vmatmul.mubr.f32.gmra.mrb[26].mxu1 %v1346_v57  ;;  %v1315_v57 = vmul.f32 %v1243_v48, %v4102_v47  ;;  %v1278_v48 = vld [vmem:[#allocation11 + $0x188] sm:$0xff] }
 0x36f   : > { %3073 = vmatpush3.bf16.msra.mxu1 %v3072_v41  ;;  %1611 = vmatprep.mubr.f32.mxu1 %v1356_v6  ;;  %v1305_v41 = vmul.f32 %v1233_v38, %v3887_v10  ;;  %v1252_v6 = vld [vmem:[#allocation11 + $0xb8] sm:$0xff]  ;;  %v1509_v38 = vld [vmem:[#allocation10 + $0x440] sm:$0xff]  ;;  %v1515_v10 = vld [vmem:[#allocation10 + $0x470] sm:$0xff] }
 0x370   : > { %3075 = vmatprep.subr.bf16.mxu1 %v3074_v58  ;;  %v1242_v58 = vld [vmem:[#allocation11 + $0x68] sm:$0xff]  ;;  %v1324_v13 = vmul.f32 %v1252_v6, %v4109_v4  ;;  %v1287_v6 = vld [vmem:[#allocation11 + $0x1d0] sm:$0xff] }
 0x371   : > { %v1314_v59 = vmul.f32 %v1242_v58, %v3892_v49  ;;  %v1216_v49 = vrot.slane %v3903_v52, 1  ;;  %v1350_v52 = vmul.f32 %v1278_v48, %v3908_v53  ;;  %v1512_v58 = vld [vmem:[#allocation10 + $0x458] sm:$0xff] }
 0x372   : > { %1612 = vmatmul.mubr.f32.gmra.mrb[28].mxu1 %v1355_v14  ;;  %v1323_v14 = vmul.f32 %v1251_v63, %v3895_v50  ;;  %v1217_v50 = vrot.slane %v3908_v53, 1  ;;  %v1297_v63 = vld [vmem:[#allocation11 + $0x220] sm:$0xff] }
 0x373   : > { %3077 = vmatpush3.bf16.msra.mxu1 %v3076_v0  ;;  %1616 = vmatprep.mubr.f32.mxu1 %v1365_v20  ;;  %v1503_v0 = vld [vmem:[#allocation10 + $0x410] sm:$0xff]  ;;  %v4116_v18 = vsel %vm1220_vm2, %v1215_v60, %v1216_v49  ;;  %v1288_v60 = vld [vmem:[#allocation11 + $0x1d8] sm:$0xff] }
 0x374   : > { %3079 = vmatprep.subr.bf16.mxu1 %v3078_v15  ;;  %v3122_v11 = vpack.c.bf16 %v1504_v3, %v1503_v0  ;;  %v1505_v15 = vld [vmem:[#allocation10 + $0x420] sm:$0xff] }
 0x375   : > { %v3126_v19 = vpack.c.bf16 %v1506_v16, %v1505_v15  ;;  %v1296_v15 = vld [vmem:[#allocation11 + $0x218] sm:$0xff] }
 0x376   : > { %1617 = vmatmul.mubr.f32.gmra.mrb[30].mxu1 %v1364_v27  ;;  %v1508_v27 = vld [vmem:[#allocation10 + $0x438] sm:$0xff] }
 0x377   : > { %3081 = vmatpush3.bf16.msra.mxu1 %v3080_v39  ;;  %1791 = vmatprep.mubr.f32.mxu1 %v1306_v40  ;;  %v1261_v39 = vld [vmem:[#allocation11 + $0x100] sm:$0xff]  ;;  %v3130_v34 = vpack.c.bf16 %v1508_v27, %v1507_v12  ;;  %v1510_v40 = vld [vmem:[#allocation10 + $0x448] sm:$0xff]  ;;  %v4149_v16 = vld [vmem:[%s3868_s9 + $0x38] sm:$0xff] }
 0x378   : > { %3083 = vmatprep.subr.bf16.mxu1 %v3082_v30  ;;  %v1333_v20 = vmul.f32 %v1261_v39, %v4116_v18  ;;  %v4123_v30 = vsel %vm1220_vm2, %v1216_v49, %v1217_v50  ;;  %v3134_v44 = vpack.c.bf16 %v1510_v40, %v1509_v38  ;;  %v1516_v39 = vld [vmem:[#allocation10 + $0x478] sm:$0xff] }
 0x379   : > { %v1264_v12 = vld [vmem:[#allocation11 + $0x118] sm:$0xff] }
 0x37a   : > { %v1336_v27 = vmul.f32 %v1264_v12, %v4123_v30  ;;  %v1300_v38 = vld [vmem:[#allocation11 + $0x238] sm:$0xff] }
 0x37b   : > { %3085 = vmatpush3.bf16.msra.mxu1 %v3084_v35  ;;  %v1342_v35 = vmul.f32 %v1270_v33, %v4123_v30  ;;  %v1273_v33 = vld [vmem:[#allocation11 + $0x160] sm:$0xff]  ;;  %v1372_v40 = vmul.f32 %v1300_v38, %v4095_v37  ;;  %v1232_v38 = vld [vmem:[#allocation11 + $0x18] sm:$0xff] }
 0x37c   : > { %3119 = vmatprep.subr.bf16.mxu1 %v3118_v56 }
 0x37e   : > { %1792 = vmatmul.mubr.f32.vlgmr.msra.gmra.mrb[32].mxu1 %v1305_v41  ;;  %v4130_v41 = vsel %vm1220_vm2, %v1217_v50, %v1218_v51 }
 0x37f   : > { %1796 = vmatprep.mubr.f32.mxu1 %v1315_v57  ;;  %3121 = vmatpush3.bf16.msra.mxu1 %v3118_v56  ;;  %v1351_v45 = vmul.f32 %v1279_v43, %v4130_v41  ;;  %v1219_v56 = vrot.slane %v3918_v55, 1  ;;  %v1511_v57 = vld [vmem:[#allocation10 + $0x450] sm:$0xff]  ;;  %v1359_v55 = vmul.f32 %v1287_v6, %v3911_v54  ;;  %v1368_v54 = vmul.f32 %v4149_v16, %v1296_v15 }
 0x380   : > { %3123 = vmatprep.subr.bf16.mxu1 %v3122_v11  ;;  %v3138_v0 = vpack.c.bf16 %v1512_v58, %v1511_v57  ;;  %v1423_v6 = vld [vmem:[#allocation10 + $0x190] sm:$0xff] }
 0x381   : > { %v4145_v53 = vsel %vm1220_vm2, %v1219_v56, %v1212_v24  ;;  %v3146_v24 = vpack.c.bf16 %v1516_v39, %v1515_v10  ;;  %v1408_v10 = vld [vmem:[#allocation10 + $0x118] sm:$0xff]  ;;  %v1425_v39 = vld [vmem:[#allocation10 + $0x1a0] sm:$0xff] }
 0x382   : > { %1797 = vmatmul.mubr.f32.gmra.mrb[34].mxu1 %v1314_v59  ;;  %v4137_v59 = vsel %vm1220_vm2, %v1218_v51, %v1219_v56  ;;  %v1369_v49 = vmul.f32 %v1297_v63, %v4145_v53 }
 0x383   : > { %1801 = vmatprep.mubr.f32.mxu1 %v1324_v13  ;;  %3125 = vmatpush3.bf16.msra.mxu1 %v3122_v11  ;;  %v1360_v3 = vmul.f32 %v1288_v60, %v4137_v59  ;;  %v1513_v11 = vld [vmem:[#allocation10 + $0x460] sm:$0xff]  ;;  %v1514_v13 = vld [vmem:[#allocation10 + $0x468] sm:$0xff] }
 0x384   : > { %3127 = vmatprep.subr.bf16.mxu1 %v3126_v19  ;;  %v1405_v60 = vld [vmem:[#allocation10 + $0x100] sm:$0xff] }
 0x386   : > { %1802 = vmatmul.mubr.f32.gmra.mrb[36].mxu1 %v1323_v14  ;;  %v3142_v14 = vpack.c.bf16 %v1514_v13, %v1513_v11 }
 0x387   : > { %1806 = vmatprep.mubr.f32.mxu1 %v1333_v20  ;;  %3129 = vmatpush3.bf16.msra.mxu1 %v3126_v19  ;;  %v1237_v19 = vld [vmem:[#allocation11 + $0x40] sm:$0xff]  ;;  %v1318_v20 = vmul.f32 %v1246_v62, %v4109_v4  ;;  %v1426_v62 = vld [vmem:[#allocation10 + $0x1a8] sm:$0xff] }
 0x388   : > { %3131 = vmatprep.subr.bf16.mxu1 %v3130_v34  ;;  %v1309_v7 = vmul.f32 %v1237_v19, %v4102_v47 }
 0x38a   : > { %1807 = vmatmul.mubr.f32.gmra.mrb[38].mxu1 %v1332_v23  ;;  %v1255_v23 = vld [vmem:[#allocation11 + $0xd0] sm:$0xff] }
 0x38b   : > { %1811 = vmatprep.mubr.f32.mxu1 %v1342_v35  ;;  %3133 = vmatpush3.bf16.msra.mxu1 %v3130_v34  ;;  %v1327_v50 = vmul.f32 %v1255_v23, %v4116_v18  ;;  %v1345_v34 = vmul.f32 %v1273_v33, %v4130_v41  ;;  %v1282_v35 = vld [vmem:[#allocation11 + $0x1a8] sm:$0xff]  ;;  %v1409_v23 = vld [vmem:[#allocation10 + $0x120] sm:$0xff] }
 0x38c   : > { %3135 = vmatprep.subr.bf16.mxu1 %v3134_v44  ;;  %v1354_v36 = vmul.f32 %v1282_v35, %v4137_v59 }
 0x38e   : > { %1812 = vmatmul.mubr.f32.gmra.mrb[40].mxu1 %v1341_v1  ;;  %v1291_v1 = vld [vmem:[#allocation11 + $0x1f0] sm:$0xff] }
 0x38f   : > { %1816 = vmatprep.mubr.f32.mxu1 %v1351_v45  ;;  %3137 = vmatpush3.bf16.msra.mxu1 %v3134_v44  ;;  %v1363_v51 = vmul.f32 %v1291_v1, %v4145_v53 }
 0x390   : > { %3139 = vmatprep.subr.bf16.mxu1 %v3138_v0 }
 0x392   : > { %1817 = vmatmul.mubr.f32.gmra.mrb[42].mxu1 %v1350_v52 }
 0x393   : > { %1821 = vmatprep.mubr.f32.mxu1 %v1360_v3  ;;  %3141 = vmatpush3.bf16.msra.mxu1 %v3138_v0  ;;  %v1406_v0 = vld [vmem:[#allocation10 + $0x108] sm:$0xff] }
 0x394   : > { %3143 = vmatprep.subr.bf16.mxu1 %v3142_v14  ;;  %v3024_v13 = vpack.c.bf16 %v1406_v0, %v1405_v60  ;;  %v1432_v60 = vld [vmem:[#allocation10 + $0x1d8] sm:$0xff] }
 0x396   : > { %1822 = vmatmul.mubr.f32.gmra.mrb[44].mxu1 %v1359_v55  ;;  %v1424_v55 = vld [vmem:[#allocation10 + $0x198] sm:$0xff] }
 0x397   : > { %1826 = vmatprep.mubr.f32.mxu1 %v1369_v49  ;;  %3145 = vmatpush3.bf16.msra.mxu1 %v3142_v14  ;;  %v3026_v15 = vpack.c.bf16 %v1424_v55, %v1423_v6  ;;  %v1416_v6 = vld [vmem:[#allocation10 + $0x158] sm:$0xff]  ;;  %v1433_v55 = vld [vmem:[#allocation10 + $0x1e0] sm:$0xff] }
 0x398   : > { %3147 = vmatprep.subr.bf16.mxu1 %v3146_v24 }
 0x39a   : > { %1827 = vmatmul.mubr.f32.gmra.mrb[46].mxu1 %v1368_v54  ;;  %v1407_v54 = vld [vmem:[#allocation10 + $0x110] sm:$0xff] }
 0x39b   : > { %3149 = vmatpush3.bf16.msra.mxu1 %v3146_v24  ;;  %2850 = vmatprep.mubr.f32.mxu1 %v1309_v7  ;;  %v3028_v19 = vpack.c.bf16 %v1408_v10, %v1407_v54  ;;  %v3030_v7 = vpack.c.bf16 %v1426_v62, %v1425_v39  ;;  %v1420_v39 = vld [vmem:[#allocation10 + $0x178] sm:$0xff]  ;;  %v1485_v62 = vld [vmem:[#allocation10 + $0x380] sm:$0xff] }
 0x39e   : > { %2851 = vmatmul.mubr.f32.vlgmr.msra.gmra.mrb[48].mxu1 %v1318_v20 }
 0x39f   : > { %2853 = vmatprep.mubr.f32.mxu1 %v1327_v50  ;;  %v1410_v50 = vld [vmem:[#allocation10 + $0x128] sm:$0xff] }
 0x3a2   : > { %2854 = vmatmul.mubr.f32.gmra.mrb[50].mxu1 %v1336_v27  ;;  %v1427_v27 = vld [vmem:[#allocation10 + $0x1b0] sm:$0xff] }
 0x3a3   : > { %2856 = vmatprep.mubr.f32.mxu1 %v1345_v34  ;;  %v3032_v34 = vpack.c.bf16 %v1410_v50, %v1409_v23  ;;  %v1470_v23 = vld [vmem:[#allocation10 + $0x308] sm:$0xff]  ;;  %v1241_v50 = vld [vmem:[#allocation11 + $0x60] sm:$0xff] }
 0x3a6   : > { %2857 = vmatmul.mubr.f32.gmra.mrb[52].mxu1 %v1354_v36 }
 0x3a7   : > { %2859 = vmatprep.mubr.f32.mxu1 %v1363_v51  ;;  %v1412_v51 = vld [vmem:[#allocation10 + $0x138] sm:$0xff] }
 0x3aa   : > { %2860 = vmatmul.mubr.f32.gmra.mrb[54].mxu1 %v1372_v40 }
 0x3da   : > { %v1026_v43 = vpop.xlane.xlu0 %1025 }
 0x3db   : > { %3269 = vrcp.f32 %v1026_v43  ;;  %v1430_v43 = vld [vmem:[#allocation10 + $0x1c8] sm:$0xff] }
 0x3de   : > { %v1029_v44 = vpop.xlane.xlu1 %1028 }
 0x3df   : > { %3271 = vrcp.f32 %v1029_v44  ;;  %v1032_v45 = vpop.xlane.xlu0 %1031 }
 0x3e0   : > { %3273 = vrcp.f32 %v1032_v45 }
 0x3e2   : > { %v1035_v48 = vpop.xlane.xlu1 %1034 }
 0x3e3   : > { %3275 = vrcp.f32 %v1035_v48  ;;  %v1038_v56 = vpop.xlane.xlu0 %1037  ;;  %v1304_v48 = vmul.f32 %v1232_v38, %v4042_v42  ;;  %v1489_v38 = vld [vmem:[#allocation10 + $0x3a0] sm:$0xff] }
 0x3e4   : > { %3277 = vrcp.f32 %v1038_v56 }
 0x3e5   : > { %v3270_v52 = vpop.eup %3269 }
 0x3e6   : > { %v1041_v57 = vpop.xlane.xlu1 %1040  ;;  %v1056_v58 = vmul.f32 %v3270_v52, %v3988_v2  ;;  %v1413_v52 = vld [vmem:[#allocation10 + $0x140] sm:$0xff] }
 0x3e7   : > { %3279 = vrcp.f32 %v1041_v57  ;;  %v1044_v3 = vpop.xlane.xlu0 %1043  ;;  %v1414_v57 = vld [vmem:[#allocation10 + $0x148] sm:$0xff] }
 0x3e8   : > { %3281 = vrcp.f32 %v1044_v3  ;;  %2806 = vmatprep.mubr.msk.f32.mxu0 %vm975_vm0, %v1056_v58  ;;  %v1431_v58 = vld [vmem:[#allocation10 + $0x1d0] sm:$0xff] }
 0x3e9   : > { %v3272_v11 = vpop.eup %3271  ;;  %v3042_v0 = vpack.c.bf16 %v1432_v60, %v1431_v58  ;;  %v1415_v3 = vld [vmem:[#allocation10 + $0x150] sm:$0xff] }
 0x3ea   : > { %v3274_v63 = vpop.eup %3273  ;;  %v1057_v14 = vmul.f32 %v3272_v11, %v3993_v22  ;;  %v1047_v49 = vpop.xlane.xlu1 %1046  ;;  %v1434_v11 = vld [vmem:[#allocation10 + $0x1e8] sm:$0xff] }
 0x3eb   : > { %3283 = vrcp.f32 %v1047_v49  ;;  %v1058_v2 = vmul.f32 %v3274_v63, %v3995_v5  ;;  %v1428_v5 = vld [vmem:[#allocation10 + $0x1b8] sm:$0xff]  ;;  %v1417_v63 = vld [vmem:[#allocation10 + $0x160] sm:$0xff]  ;;  %v1435_v49 = vld [vmem:[#allocation10 + $0x1f0] sm:$0xff] }
 0x3ec   : > { %2807 = vmatmul.mubr.msk.f32.vlgmr.msra.gmra.mrb[16].mxu0 %vm975_vm0, %v1057_v14  ;;  %v3034_v1 = vpack.c.bf16 %v1428_v5, %v1427_v27  ;;  %v1418_v14 = vld [vmem:[#allocation10 + $0x168] sm:$0xff]  ;;  %v1488_v27 = vld [vmem:[#allocation10 + $0x398] sm:$0xff] }
 0x3ed   : > { %v3276_v24 = vpop.eup %3275  ;;  %3025 = vmatpush3.bf16.msra.mxu0 %v3024_v13  ;;  %2809 = vmatprep.mubr.msk.f32.mxu0 %vm975_vm0, %v1058_v2  ;;  %v3044_v13 = vpack.c.bf16 %v1416_v6, %v1415_v3  ;;  %v3048_v54 = vpack.c.bf16 %v1418_v14, %v1417_v63  ;;  %v1419_v2 = vld [vmem:[#allocation10 + $0x170] sm:$0xff]  ;;  %v1476_v6 = vld [vmem:[#allocation10 + $0x338] sm:$0xff] }
 0x3ee   : > { %v3278_v20 = vpop.eup %3277  ;;  %3027 = vmatprep.subr.bf16.mxu0 %v3026_v15  ;;  %v1059_v22 = vmul.f32 %v3276_v24, %v4001_v25  ;;  %v1411_v25 = vld [vmem:[#allocation10 + $0x130] sm:$0xff]  ;;  %v1436_v15 = vld [vmem:[#allocation10 + $0x1f8] sm:$0xff]  ;;  %v1486_v24 = vld [vmem:[#allocation10 + $0x388] sm:$0xff] }
 0x3ef   : > { %v1060_v12 = vmul.f32 %v3278_v20, %v4003_v26  ;;  %v1429_v26 = vld [vmem:[#allocation10 + $0x1c0] sm:$0xff]  ;;  %v3036_v45 = vpack.c.bf16 %v1412_v51, %v1411_v25  ;;  %v3050_v10 = vpack.c.bf16 %v1436_v15, %v1435_v49  ;;  %v1231_v20 = vld [vmem:[#allocation11 + $0x10] sm:$0xff]  ;;  %v1472_v25 = vld [vmem:[#allocation10 + $0x318] sm:$0xff] }
 0x3f0   : > { %2810 = vmatmul.mubr.msk.f32.gmra.mrb[18].mxu0 %vm975_vm0, %v1059_v22  ;;  %v3038_v56 = vpack.c.bf16 %v1430_v43, %v1429_v26  ;;  %v3086_v22 = vpack.c.bf16 %v1486_v24, %v1485_v62  ;;  %v1303_v5 = vmul.f32 %v1231_v20, %v4145_v53  ;;  %v1250_v51 = vld [vmem:[#allocation11 + $0xa8] sm:$0xff]  ;;  %v1475_v3 = vld [vmem:[#allocation10 + $0x330] sm:$0xff]  ;;  %v1477_v15 = vld [vmem:[#allocation10 + $0x340] sm:$0xff] }
 0x3f1   : > { %v3280_v33 = vpop.eup %3279  ;;  %3029 = vmatpush3.bf16.msra.mxu0 %v3028_v19  ;;  %2812 = vmatprep.mubr.msk.f32.mxu0 %vm975_vm0, %v1060_v12  ;;  %v3052_v19 = vpack.c.bf16 %v1420_v39, %v1419_v2  ;;  %v1487_v12 = vld [vmem:[#allocation10 + $0x390] sm:$0xff]  ;;  %v1322_v53 = vmul.f32 %v1250_v51, %v4056_v17  ;;  %v3100_v63 = vpack.c.bf16 %v1476_v6, %v1475_v3  ;;  %v1496_v39 = vld [vmem:[#allocation10 + $0x3d8] sm:$0xff] }
 0x3f2   : > { %v3282_v35 = vpop.eup %3281  ;;  %3031 = vmatprep.subr.bf16.mxu0 %v3030_v7  ;;  %v1061_v36 = vmul.f32 %v3280_v33, %v4009_v28  ;;  %v1469_v7 = vld [vmem:[#allocation10 + $0x300] sm:$0xff]  ;;  %v1267_v14 = vld [vmem:[#allocation11 + $0x130] sm:$0xff]  ;;  %v1500_v51 = vld [vmem:[#allocation10 + $0x3f8] sm:$0xff] }
 0x3f3   : > { %v1062_v40 = vmul.f32 %v3282_v35, %v4011_v29  ;;  %v3040_v29 = vpack.c.bf16 %v1414_v57, %v1413_v52  ;;  %v3088_v33 = vpack.c.bf16 %v1470_v23, %v1469_v7  ;;  %v1240_v35 = vld [vmem:[#allocation11 + $0x58] sm:$0xff]  ;;  %v1491_v52 = vld [vmem:[#allocation10 + $0x3b0] sm:$0xff]  ;;  %v1339_v62 = vmul.f32 %v1267_v14, %v4116_v18  ;;  %v1286_v23 = vld [vmem:[#allocation11 + $0x1c8] sm:$0xff] }
 0x3f4   : > { %2813 = vmatmul.mubr.msk.f32.gmra.mrb[20].mxu0 %vm975_vm0, %v1061_v36  ;;  %v3090_v36 = vpack.c.bf16 %v1488_v27, %v1487_v12  ;;  %v1312_v26 = vmul.f32 %v1240_v35, %v4095_v37  ;;  %v1492_v57 = vld [vmem:[#allocation10 + $0x3b8] sm:$0xff]  ;;  %v1495_v2 = vld [vmem:[#allocation10 + $0x3d0] sm:$0xff]  ;;  %v1498_v12 = vld [vmem:[#allocation10 + $0x3e8] sm:$0xff]  ;;  %v1358_v18 = vmul.f32 %v1286_v23, %v4085_v21 }
 0x3f5   : > { %v3284_v44 = vpop.eup %3283  ;;  %3033 = vmatpush3.bf16.msra.mxu0 %v3032_v34  ;;  %2815 = vmatprep.mubr.msk.f32.mxu0 %vm975_vm0, %v1062_v40  ;;  %v1313_v34 = vmul.f32 %v1241_v50, %v4049_v61  ;;  %v1490_v40 = vld [vmem:[#allocation10 + $0x3a8] sm:$0xff]  ;;  %v3106_v20 = vpack.c.bf16 %v1496_v39, %v1495_v2  ;;  %v1480_v7 = vld [vmem:[#allocation10 + $0x358] sm:$0xff]  ;;  %v1497_v50 = vld [vmem:[#allocation10 + $0x3e0] sm:$0xff] }
 0x3f6   : > { %3035 = vmatprep.subr.bf16.mxu0 %v3034_v1  ;;  %v1063_v28 = vmul.f32 %v3284_v44, %v4017_v32  ;;  %v3046_v32 = vpack.c.bf16 %v1434_v11, %v1433_v55  ;;  %v1471_v1 = vld [vmem:[#allocation10 + $0x310] sm:$0xff]  ;;  %v1249_v44 = vld [vmem:[#allocation11 + $0xa0] sm:$0xff]  ;;  %v1268_v55 = vld [vmem:[#allocation11 + $0x138] sm:$0xff] }
 0x3f7   : > { %v3092_v43 = vpack.c.bf16 %v1472_v25, %v1471_v1  ;;  %v1321_v58 = vmul.f32 %v1249_v44, %v4102_v47  ;;  %v1493_v11 = vld [vmem:[#allocation10 + $0x3c0] sm:$0xff]  ;;  %v1340_v47 = vmul.f32 %v1268_v55, %v4070_v46  ;;  %v1295_v1 = vld [vmem:[#allocation11 + $0x210] sm:$0xff]  ;;  %v1484_v44 = vld [vmem:[#allocation10 + $0x378] sm:$0xff] }
 0x3f8   : > { %2816 = vmatmul.mubr.msk.f32.gmra.mrb[22].mxu0 %vm975_vm0, %v1063_v28  ;;  %v1474_v28 = vld [vmem:[#allocation10 + $0x328] sm:$0xff]  ;;  %v1481_v35 = vld [vmem:[#allocation10 + $0x360] sm:$0xff]  ;;  %v1499_v25 = vld [vmem:[#allocation10 + $0x3f0] sm:$0xff] }
 0x3f9   : > { %3037 = vmatpush3.bf16.msra.mxu0 %v3036_v45  ;;  %1686 = vmatprep.mubr.f32.mxu0 %v1304_v48  ;;  %v3094_v45 = vpack.c.bf16 %v1490_v40, %v1489_v38  ;;  %v1473_v48 = vld [vmem:[#allocation10 + $0x320] sm:$0xff]  ;;  %v1367_v40 = vmul.f32 %v1295_v1, %v4035_v9  ;;  %v4203_v3 = vld [vmem:[%s3868_s9 + $0x18] sm:$0xff]  ;;  %v1263_v55 = vld [vmem:[#allocation11 + $0x110] sm:$0xff] }
 0x3fa   : > { %3039 = vmatprep.subr.bf16.mxu0 %v3038_v56  ;;  %v1259_v56 = vld [vmem:[#allocation11 + $0xf0] sm:$0xff]  ;;  %v3096_v60 = vpack.c.bf16 %v1474_v28, %v1473_v48  ;;  %v4213_v14 = vld [vmem:[%s3868_s9 + $0x28] sm:$0xff]  ;;  %v1280_v39 = vld [vmem:[#allocation11 + $0x198] sm:$0xff] }
 0x3fb   : > { %v1331_v37 = vmul.f32 %v1259_v56, %v4063_v31  ;;  %v1235_v28 = vld [vmem:[#allocation11 + $0x30] sm:$0xff]  ;;  %v4193_v56 = vld [vmem:[%s3868_s9 + $0x8] sm:$0xff] }
 0x3fd   : > { %3041 = vmatpush3.bf16.msra.mxu0 %v3040_v29  ;;  %v1258_v29 = vld [vmem:[#allocation11 + $0xe8] sm:$0xff] }
 0x3fe   : > { %3043 = vmatprep.subr.bf16.mxu0 %v3042_v0  ;;  %v3098_v0 = vpack.c.bf16 %v1492_v57, %v1491_v52  ;;  %v1245_v57 = vld [vmem:[#allocation11 + $0x80] sm:$0xff] }
 0x401   : > { %3045 = vmatpush3.bf16.msra.mxu0 %v3044_v13  ;;  %v1494_v13 = vld [vmem:[#allocation10 + $0x3c8] sm:$0xff] }
 0x402   : > { %3047 = vmatprep.subr.bf16.mxu0 %v3046_v32  ;;  %v1330_v32 = vmul.f32 %v1258_v29, %v4109_v4  ;;  %v3102_v49 = vpack.c.bf16 %v1494_v13, %v1493_v11  ;;  %v1254_v29 = vld [vmem:[#allocation11 + $0xc8] sm:$0xff]  ;;  %v4208_v13 = vld [vmem:[%s3868_s9 + $0x20] sm:$0xff] }
 0x403   : > { %v1326_v6 = vmul.f32 %v4203_v3, %v1254_v29 }
 0x405   : > { %3049 = vmatpush3.bf16.msra.mxu0 %v3048_v54  ;;  %v1478_v54 = vld [vmem:[#allocation10 + $0x348] sm:$0xff] }
 0x406   : > { %3051 = vmatprep.subr.bf16.mxu0 %v3050_v10  ;;  %v1277_v10 = vld [vmem:[#allocation11 + $0x180] sm:$0xff]  ;;  %v3104_v24 = vpack.c.bf16 %v1478_v54, %v1477_v15  ;;  %v1271_v15 = vld [vmem:[#allocation11 + $0x150] sm:$0xff] }
 0x407   : > { %v1349_v4 = vmul.f32 %v1277_v10, %v4077_v8  ;;  %v1281_v54 = vld [vmem:[#allocation11 + $0x1a0] sm:$0xff]  ;;  %v4218_v10 = vld [vmem:[%s3868_s9 + $0x30] sm:$0xff] }
 0x408   : > { %v1353_v2 = vmul.f32 %v4218_v10, %v1281_v54 }
 0x409   : > { %3053 = vmatpush3.bf16.msra.mxu0 %v3052_v19  ;;  %v1276_v19 = vld [vmem:[#allocation11 + $0x178] sm:$0xff] }
 0x40a   : > { %3087 = vmatprep.subr.bf16.mxu0 %v3086_v22  ;;  %v1479_v22 = vld [vmem:[#allocation10 + $0x350] sm:$0xff]  ;;  %v1348_v27 = vmul.f32 %v1276_v19, %v4123_v30 }
 0x40b   : > { %v1299_v19 = vld [vmem:[#allocation11 + $0x230] sm:$0xff] }
 0x40c   : > { %1687 = vmatmul.mubr.f32.vlgmr.msra.gmra.mrb[24].mxu0 %v1303_v5  ;;  %v3108_v5 = vpack.c.bf16 %v1480_v7, %v1479_v22  ;;  %v1298_v7 = vld [vmem:[#allocation11 + $0x228] sm:$0xff] }
 0x40d   : > { %3089 = vmatpush3.bf16.msra.mxu0 %v3088_v33  ;;  %1691 = vmatprep.mubr.f32.mxu0 %v1313_v34  ;;  %v1285_v33 = vld [vmem:[#allocation11 + $0x1c0] sm:$0xff]  ;;  %v3110_v34 = vpack.c.bf16 %v1498_v12, %v1497_v50  ;;  %v1370_v23 = vmul.f32 %v1298_v7, %v4042_v42 }
 0x40e   : > { %3091 = vmatprep.subr.bf16.mxu0 %v3090_v36  ;;  %v1482_v36 = vld [vmem:[#allocation10 + $0x368] sm:$0xff]  ;;  %v1357_v38 = vmul.f32 %v1285_v33, %v4130_v41 }
 0x40f   : > { %v3112_v30 = vpack.c.bf16 %v1482_v36, %v1481_v35 }
 0x410   : > { %1692 = vmatmul.mubr.f32.gmra.mrb[26].mxu0 %v1312_v26  ;;  %v1294_v26 = vld [vmem:[#allocation11 + $0x208] sm:$0xff] }
 0x411   : > { %3093 = vmatpush3.bf16.msra.mxu0 %v3092_v43  ;;  %1696 = vmatprep.mubr.f32.mxu0 %v1322_v53  ;;  %v3114_v43 = vpack.c.bf16 %v1500_v51, %v1499_v25  ;;  %v1483_v53 = vld [vmem:[#allocation10 + $0x370] sm:$0xff]  ;;  %v1366_v48 = vmul.f32 %v1294_v26, %v4137_v59 }
 0x412   : > { %3095 = vmatprep.subr.bf16.mxu0 %v3094_v45  ;;  %v1236_v45 = vld [vmem:[#allocation11 + $0x38] sm:$0xff]  ;;  %v3116_v41 = vpack.c.bf16 %v1484_v44, %v1483_v53 }
 0x413   : > { %v1308_v52 = vmul.f32 %v4193_v56, %v1236_v45 }
 0x414   : > { %1697 = vmatmul.mubr.f32.gmra.mrb[28].mxu0 %v1321_v58  ;;  %v1307_v58 = vmul.f32 %v1235_v28, %v4049_v61  ;;  %v1253_v61 = vld [vmem:[#allocation11 + $0xc0] sm:$0xff] }
 0x415   : > { %3097 = vmatpush3.bf16.msra.mxu0 %v3096_v60  ;;  %1701 = vmatprep.mubr.f32.mxu0 %v1331_v37  ;;  %v4198_v60 = vld [vmem:[%s3868_s9 + $0x10] sm:$0xff]  ;;  %v1244_v37 = vld [vmem:[#allocation11 + $0x78] sm:$0xff]  ;;  %v1325_v11 = vmul.f32 %v1253_v61, %v4063_v31  ;;  %v1343_v31 = vmul.f32 %v1271_v15, %v4077_v8  ;;  %v4225_v8 = vld [vmem:[%s3868_s9] sm:$0xff]  ;;  %s4443_s9 = sld [smem:[#allocation21_spill]] }
 0x416   : > { %3099 = vmatprep.subr.bf16.mxu0 %v3098_v0  ;;  %v1317_v59 = vmul.f32 %v4198_v60, %v1245_v57  ;;  %v1316_v0 = vmul.f32 %v1244_v37, %v4056_v17  ;;  %v1371_v22 = vmul.f32 %v4225_v8, %v1299_v19 }
 0x418   : > { %1702 = vmatmul.mubr.f32.gmra.mrb[30].mxu0 %v1330_v32  ;;  %v1335_v32 = vmul.f32 %v4208_v13, %v1263_v55 }
 0x419   : > { %3101 = vmatpush3.bf16.msra.mxu0 %v3100_v63  ;;  %1706 = vmatprep.mubr.f32.mxu0 %v1340_v47  ;;  %v1262_v63 = vld [vmem:[#allocation11 + $0x108] sm:$0xff]  ;;  %v1272_v47 = vld [vmem:[#allocation11 + $0x158] sm:$0xff] }
 0x41a   : > { %3103 = vmatprep.subr.bf16.mxu0 %v3102_v49  ;;  %v1334_v17 = vmul.f32 %v1262_v63, %v4070_v46  ;;  %v1344_v49 = vmul.f32 %v4213_v14, %v1272_v47  ;;  %v1352_v46 = vmul.f32 %v1280_v39, %v4085_v21 }
 0x41c   : > { %1707 = vmatmul.mubr.f32.gmra.mrb[32].mxu0 %v1339_v62  ;;  %v1290_v62 = vld [vmem:[#allocation11 + $0x1e8] sm:$0xff] }
 0x41d   : > { %3105 = vmatpush3.bf16.msra.mxu0 %v3104_v24  ;;  %1711 = vmatprep.mubr.f32.mxu0 %v1349_v4  ;;  %v1362_v24 = vmul.f32 %v4149_v16, %v1290_v62  ;;  %v1289_v4 = vld [vmem:[#allocation11 + $0x1e0] sm:$0xff] }
 0x41e   : > { %3107 = vmatprep.subr.bf16.mxu0 %v3106_v20  ;;  %v1361_v20 = vmul.f32 %v1289_v4, %v4035_v9 }
 0x420   : > { %1712 = vmatmul.mubr.f32.gmra.mrb[34].mxu0 %v1348_v27 }
 0x421   : > { %3109 = vmatpush3.bf16.msra.mxu0 %v3108_v5  ;;  %1716 = vmatprep.mubr.f32.mxu0 %v1358_v18 }
 0x422   : > { %3111 = vmatprep.subr.bf16.mxu0 %v3110_v34 }
 0x424   : > { %1717 = vmatmul.mubr.f32.gmra.mrb[36].mxu0 %v1357_v38 }
 0x425   : > { %3113 = vmatpush3.bf16.msra.mxu0 %v3112_v30  ;;  %1721 = vmatprep.mubr.f32.mxu0 %v1367_v40 }
 0x426   : > { %3115 = vmatprep.subr.bf16.mxu0 %v3114_v43 }
 0x428   : > { %1722 = vmatmul.mubr.f32.gmra.mrb[38].mxu0 %v1366_v48 }
 0x429   : > { %3117 = vmatpush3.bf16.msra.mxu0 %v3116_v41  ;;  %1896 = vmatprep.mubr.f32.mxu0 %v1308_v52 }
 0x42c   : > { %1897 = vmatmul.mubr.f32.vlgmr.msra.gmra.mrb[40].mxu0 %v1307_v58  ;;  %v2414_v21 = vpop.f32.mrb[16].mxu1 }
 0x42d   : > { %1901 = vmatprep.mubr.f32.mxu0 %v1317_v59  ;;  %v2415_v50 = vpop.f32.mrb[17].mxu1 }
 0x42e   : > { %v4229_v12 = vadd.f32 %v2415_v50, %v2414_v21 }
 0x430   : > { %1902 = vmatmul.mubr.f32.gmra.mrb[42].mxu0 %v1316_v0 }
 0x431   : > { %1906 = vmatprep.mubr.f32.mxu0 %v1326_v6  ;;  %v2417_v27 = vpop.f32.mrb[18].mxu1 }
 0x432   : > { %v2418_v5 = vpop.f32.mrb[19].mxu1 }
 0x433   : > { %v4231_v18 = vadd.f32 %v2418_v5, %v2417_v27 }
 0x434   : > { %1907 = vmatmul.mubr.f32.gmra.mrb[44].mxu0 %v1325_v11 }
 0x435   : > { %1911 = vmatprep.mubr.f32.mxu0 %v1335_v32  ;;  %v2420_v9 = vpop.f32.mrb[20].mxu1 }
 0x436   : > { %v2421_v33 = vpop.f32.mrb[21].mxu1 }
 0x437   : > { %v4233_v34 = vadd.f32 %v2421_v33, %v2420_v9 }
 0x438   : > { %1912 = vmatmul.mubr.f32.gmra.mrb[46].mxu0 %v1334_v17 }
 0x439   : > { %1916 = vmatprep.mubr.f32.mxu0 %v1344_v49  ;;  %v2423_v35 = vpop.f32.mrb[22].mxu1 }
 0x43a   : > { %v2424_v36 = vpop.f32.mrb[23].mxu1 }
 0x43b   : > { %v4235_v1 = vadd.f32 %v2424_v36, %v2423_v35 }
 0x43c   : > { %1917 = vmatmul.mubr.f32.gmra.mrb[48].mxu0 %v1343_v31 }
 0x43d   : > { %1921 = vmatprep.mubr.f32.mxu0 %v1353_v2  ;;  %v2426_v25 = vpop.f32.mrb[24].mxu1 }
 0x43e   : > { %v2427_v42 = vpop.f32.mrb[25].mxu1 }
 0x43f   : > { %v4237_v51 = vadd.f32 %v2427_v42, %v2426_v25 }
 0x440   : > { %1922 = vmatmul.mubr.f32.gmra.mrb[50].mxu0 %v1352_v46 }
 0x441   : > { %1926 = vmatprep.mubr.f32.mxu0 %v1362_v24  ;;  %v2429_v38 = vpop.f32.mrb[26].mxu1 }
 0x442   : > { %v2430_v30 = vpop.f32.mrb[27].mxu1 }
 0x443   : > { %v4239_v40 = vadd.f32 %v2430_v30, %v2429_v38 }
 0x444   : > { %1927 = vmatmul.mubr.f32.gmra.mrb[52].mxu0 %v1361_v20 }
 0x445   : > { %1931 = vmatprep.mubr.f32.mxu0 %v1371_v22  ;;  %v2432_v26 = vpop.f32.mrb[28].mxu1 }
 0x446   : > { %v2433_v43 = vpop.f32.mrb[29].mxu1 }
 0x447   : > { %v4241_v53 = vadd.f32 %v2433_v43, %v2432_v26 }
 0x448   : > { %1932 = vmatmul.mubr.f32.gmra.mrb[54].mxu0 %v1370_v23 }
 0x449   : > { %v2435_v44 = vpop.f32.mrb[30].mxu1 }
 0x44a   : > { %v2436_v45 = vpop.f32.mrb[31].mxu1 }
 0x44b   : > { %v4243_v48 = vadd.f32 %v2436_v45, %v2435_v44 }
 0x451   : > { %v2526_v28 = vpop.f32.mrb[32].mxu1 }
 0x452   : > { %v2527_v41 = vpop.f32.mrb[33].mxu1 }
 0x453   : > { %v2528_v52 = vadd.f32 %v2527_v41, %v2526_v28 }
 0x455   : > { %v2529_v57 = vpop.f32.mrb[34].mxu1 }
 0x456   : > { %v2530_v58 = vpop.f32.mrb[35].mxu1 }
 0x457   : > { %v2531_v59 = vadd.f32 %v2530_v58, %v2529_v57 }
 0x459   : > { %v2532_v37 = vpop.f32.mrb[36].mxu1 }
 0x45a   : > { %v2533_v29 = vpop.f32.mrb[37].mxu1 }
 0x45b   : > { %v2534_v0 = vadd.f32 %v2533_v29, %v2532_v37 }
 0x45d   : > { %v2535_v6 = vpop.f32.mrb[38].mxu1 }
 0x45e   : > { %v2536_v61 = vpop.f32.mrb[39].mxu1 }
 0x45f   : > { %v2537_v55 = vadd.f32 %v2536_v61, %v2535_v6 }
 0x461   : > { %v2538_v11 = vpop.f32.mrb[40].mxu1 }
 0x462   : > { %v2539_v32 = vpop.f32.mrb[41].mxu1 }
 0x463   : > { %v2540_v63 = vadd.f32 %v2539_v32, %v2538_v11 }
 0x465   : > { %v2541_v47 = vpop.f32.mrb[42].mxu1 }
 0x466   : > { %v2542_v17 = vpop.f32.mrb[43].mxu1 }
 0x467   : > { %v2543_v49 = vadd.f32 %v2542_v17, %v2541_v47 }
 0x469   : > { %v2544_v15 = vpop.f32.mrb[44].mxu1 }
 0x46a   : > { %v2545_v54 = vpop.f32.mrb[45].mxu1 }
 0x46b   : > { %v2546_v31 = vadd.f32 %v2545_v54, %v2544_v15 }
 0x46d   : > { %v2547_v2 = vpop.f32.mrb[46].mxu1 }
 0x46e   : > { %v2548_v39 = vpop.f32.mrb[47].mxu1 }
 0x46f   : > { %v2549_v62 = vadd.f32 %v2548_v39, %v2547_v2 }
 0x471   : > { %v4245_v46 = vpop.f32.mrb[48].mxu1 }
 0x472   : > { %v4247_v24 = vpop.f32.mrb[49].mxu1 }
 0x475   : > { %v4249_v4 = vpop.f32.mrb[50].mxu1 }
 0x476   : > { %v4251_v19 = vpop.f32.mrb[51].mxu1 }
 0x479   : > { %v4253_v20 = vpop.f32.mrb[52].mxu1 }
 0x47a   : > { %v4255_v22 = vpop.f32.mrb[53].mxu1 }
 0x47d   : > { %v4257_v7 = vpop.f32.mrb[54].mxu1 }
 0x47e   : > { %v4259_v23 = vpop.f32.mrb[55].mxu1 }
 0x4bf   : > { %v4261_v21 = vpop.f32.mrb[16].mxu0 }
 0x4c0   : > { %v4263_v50 = vpop.f32.mrb[17].mxu0 }
 0x4c3   : > { %v4265_v27 = vpop.f32.mrb[18].mxu0 }
 0x4c4   : > { %v4267_v5 = vpop.f32.mrb[19].mxu0 }
 0x4c7   : > { %v4269_v9 = vpop.f32.mrb[20].mxu0 }
 0x4c8   : > { %v4271_v33 = vpop.f32.mrb[21].mxu0 }
 0x4cb   : > { %v4273_v35 = vpop.f32.mrb[22].mxu0 }
 0x4cc   : > { %v4275_v36 = vpop.f32.mrb[23].mxu0 }
 0x4df   : > { %v2470_v25 = vpop.f32.mrb[24].mxu0 }
 0x4e0   : > { %v2471_v42 = vpop.f32.mrb[25].mxu0 }
 0x4e1   : > { %v2472_v38 = vadd.f32 %v2471_v42, %v2470_v25 }
 0x4e3   : > { %v1689_v30 = vadd.f32 %v2472_v38, %v4229_v12  ;;  %v2473_v26 = vpop.f32.mrb[26].mxu0 }
 0x4e4   : > { %v2474_v43 = vpop.f32.mrb[27].mxu0 }
 0x4e5   : > { %v1794_v44 = vadd.f32 %v2528_v52, %v1689_v30  ;;  %v2475_v45 = vadd.f32 %v2474_v43, %v2473_v26 }
 0x4e7   : > { %v1694_v28 = vadd.f32 %v2475_v45, %v4231_v18  ;;  %v2476_v41 = vpop.f32.mrb[28].mxu0 }
 0x4e8   : > { %v2477_v57 = vpop.f32.mrb[29].mxu0 }
 0x4e9   : > { %v1799_v58 = vadd.f32 %v2531_v59, %v1694_v28  ;;  %v2478_v37 = vadd.f32 %v2477_v57, %v2476_v41 }
 0x4eb   : > { %v1699_v29 = vadd.f32 %v2478_v37, %v4233_v34  ;;  %v2479_v6 = vpop.f32.mrb[30].mxu0 }
 0x4ec   : > { %v2480_v61 = vpop.f32.mrb[31].mxu0 }
 0x4ed   : > { %v1804_v11 = vadd.f32 %v2534_v0, %v1699_v29  ;;  %v2481_v32 = vadd.f32 %v2480_v61, %v2479_v6 }
 0x4ef   : > { %v1704_v47 = vadd.f32 %v2481_v32, %v4235_v1  ;;  %v2482_v17 = vpop.f32.mrb[32].mxu0 }
 0x4f0   : > { %v2483_v12 = vpop.f32.mrb[33].mxu0 }
 0x4f1   : > { %v1809_v15 = vadd.f32 %v2537_v55, %v1704_v47  ;;  %v2484_v54 = vadd.f32 %v2483_v12, %v2482_v17  ;;  %v2080_v17 = vadd.f32 %v4225_v8, %v4263_v50 }
 0x4f3   : > { %v1709_v52 = vadd.f32 %v2484_v54, %v4237_v51  ;;  %v2485_v2 = vpop.f32.mrb[34].mxu0 }
 0x4f4   : > { %v2486_v18 = vpop.f32.mrb[35].mxu0 }
 0x4f5   : > { %v1814_v39 = vadd.f32 %v2540_v63, %v1709_v52  ;;  %v2487_v25 = vadd.f32 %v2486_v18, %v2485_v2 }
 0x4f7   : > { %v1714_v59 = vadd.f32 %v2487_v25, %v4239_v40  ;;  %v2488_v42 = vpop.f32.mrb[36].mxu0 }
 0x4f8   : > { %v2489_v34 = vpop.f32.mrb[37].mxu0 }
 0x4f9   : > { %v1819_v38 = vadd.f32 %v2543_v49, %v1714_v59  ;;  %v2490_v30 = vadd.f32 %v2489_v34, %v2488_v42  ;;  %v4292_v49 = vld [vmem:[%s4442_s16] ss:$0 sm:$0xff]  ;;  %s3467_s16 = sshll.u32 %s3553_s22, 4  ;;  %s3468_s16 = int_to_ptr.vmem [resolvable:$false] %s3467_s16 }
 0x4fa   : > { %s3469_s30 = scalar_lea.vmem %s3468_s16, 2048  ;;  %p3470_p13 = scmp.lt.s32.totalorder %s4359_s12, %s3468_s16 }
 0x4fb   : > { %v1719_v0 = vadd.f32 %v2490_v30, %v4241_v53  ;;  %v2491_v26 = vpop.f32.mrb[38].mxu0  ;;  %p3471_p0 = scmp.lt.s32.totalorder %s3469_s30, %s3463_s23 }
 0x4fc   : > { %v2492_v1 = vpop.f32.mrb[39].mxu0 }
 0x4fd   : > { %v4284_v43 = vadd.f32 %v2546_v31, %v1719_v0  ;;  %v2493_v55 = vadd.f32 %v2492_v1, %v2491_v26  ;;  %p3472_p2 = por %p3471_p0, %p3470_p13 }
 0x4ff   : > { %v1724_v45 = vadd.f32 %v2493_v55, %v4243_v48  ;;  %v2582_v51 = vpop.f32.mrb[40].mxu0  ;;  %v4298_v48 = vld [vmem:[%s4443_s9] ss:$0 sm:$0xff]  ;;  %p3473_p8 = pnand %p3472_p2, %p3466_p1 }
 0x500   : > { %v2583_v28 = vpop.f32.mrb[41].mxu0 }
 0x501   : > { %v4287_v41 = vadd.f32 %v2549_v62, %v1724_v45  ;;  %v2584_v63 = vadd.f32 %v2583_v28, %v2582_v51 }
 0x503   : > { %v2585_v57 = vpop.f32.mrb[42].mxu0  ;;  %v1899_v40 = vadd.f32 %v2584_v63, %v1794_v44 }
 0x504   : > { %v2586_v37 = vpop.f32.mrb[43].mxu0 }
 0x505   : > { %v2587_v53 = vadd.f32 %v2586_v37, %v2585_v57  ;;  %v2004_v31 = vadd.f32 %v4247_v24, %v1899_v40  ;;  %v2083_v57 = vadd.f32 %v4203_v3, %v4265_v27 }
 0x507   : > { %v1904_v29 = vadd.f32 %v2587_v53, %v1799_v58  ;;  %v2049_v62 = vmul.f32 %v4292_v49, %v2004_v31  ;;  %v2588_v6 = vpop.f32.mrb[44].mxu0 }
 0x508   : > { %v2589_v61 = vpop.f32.mrb[45].mxu0 }
 0x509   : > { %v2009_v44 = vadd.f32 %v4245_v46, %v1904_v29  ;;  %v2064_v32 = vadd.f32 %v4298_v48, %v2049_v62  ;;  %v2590_v47 = vadd.f32 %v2589_v61, %v2588_v6  ;;  %v2081_v46 = vadd.f32 %v4193_v56, %v4261_v21 }
 0x50a   : > { %v2082_v56 = vadd.f32 %v4198_v60, %v4267_v5 }
 0x50b   : > { %v2050_v24 = vmul.f32 %v4292_v49, %v2009_v44  ;;  %v2072_v12 = vmax.f32 %v2064_v32, 0.0  ;;  %v2591_v54 = vpop.f32.mrb[46].mxu0  ;;  %v1909_v52 = vadd.f32 %v2590_v47, %v1804_v11 }
 0x50c   : > { %v2592_v2 = vpop.f32.mrb[47].mxu0 }
 0x50d   : > { %v2065_v58 = vadd.f32 %v4298_v48, %v2050_v24  ;;  %v2088_v18 = vadd.f32 %v2080_v17, %v2072_v12  ;;  %v2593_v25 = vadd.f32 %v2592_v2, %v2591_v54  ;;  %v2014_v59 = vadd.f32 %v4251_v19, %v1909_v52 }
 0x50f   : > { %v2073_v42 = vmax.f32 %v2065_v58, 0.0  ;;  %2096 = vst [vmem:[%s4312_s24] sm:$0xff] %v2088_v18  ;;  %v1914_v8 = vadd.f32 %v2593_v25, %v1809_v15  ;;  %v2051_v50 = vmul.f32 %v4292_v49, %v2014_v59  ;;  %v2594_v11 = vpop.f32.mrb[48].mxu0 }
 0x510   : > { %v2595_v34 = vpop.f32.mrb[49].mxu0 }
 0x511   : > { %v2089_v30 = vadd.f32 %v2081_v46, %v2073_v42  ;;  %v2019_v0 = vadd.f32 %v4249_v4, %v1914_v8  ;;  %v2066_v19 = vadd.f32 %v4298_v48, %v2051_v50  ;;  %v2596_v26 = vadd.f32 %v2595_v34, %v2594_v11 }
 0x513   : > { %2097 = vst [vmem:[%s4312_s24 + $0x8] sm:$0xff] %v2089_v30  ;;  %v2052_v21 = vmul.f32 %v4292_v49, %v2019_v0  ;;  %v2074_v1 = vmax.f32 %v2066_v19, 0.0  ;;  %v2597_v55 = vpop.f32.mrb[50].mxu0  ;;  %v1919_v15 = vadd.f32 %v2596_v26, %v1814_v39 }
 0x514   : > { %v2598_v45 = vpop.f32.mrb[51].mxu0 }
 0x515   : > { %v2067_v51 = vadd.f32 %v4298_v48, %v2052_v21  ;;  %v2090_v28 = vadd.f32 %v2082_v56, %v2074_v1  ;;  %v2599_v63 = vadd.f32 %v2598_v45, %v2597_v55  ;;  %v2024_v4 = vadd.f32 %v4255_v22, %v1919_v15 }
 0x516   : > { %v2084_v22 = vadd.f32 %v4208_v13, %v4271_v33  ;;  %v2085_v13 = vadd.f32 %v4213_v14, %v4269_v9 }
 0x517   : > { %v2075_v40 = vmax.f32 %v2067_v51, 0.0  ;;  %2098 = vst [vmem:[%s4312_s24 + $0x10] sm:$0xff] %v2090_v28  ;;  %v1924_v60 = vadd.f32 %v2599_v63, %v1819_v38  ;;  %v2053_v5 = vmul.f32 %v4292_v49, %v2024_v4  ;;  %v2600_v37 = vpop.f32.mrb[52].mxu0 }
 0x518   : > { %v2601_v53 = vpop.f32.mrb[53].mxu0 }
 0x519   : > { %v2091_v31 = vadd.f32 %v2083_v57, %v2075_v40  ;;  %v2029_v39 = vadd.f32 %v4253_v20, %v1924_v60  ;;  %v2068_v29 = vadd.f32 %v4298_v48, %v2053_v5  ;;  %v2602_v62 = vadd.f32 %v2601_v53, %v2600_v37 }
 0x51b   : > { %2099 = vst [vmem:[%s4312_s24 + $0x18] sm:$0xff] %v2091_v31  ;;  %v2054_v3 = vmul.f32 %v4292_v49, %v2029_v39  ;;  %v2076_v27 = vmax.f32 %v2068_v29, 0.0  ;;  %v2603_v6 = vpop.f32.mrb[54].mxu0  ;;  %v1929_v38 = vadd.f32 %v2602_v62, %v4284_v43 }
 0x51c   : > { %v2604_v61 = vpop.f32.mrb[55].mxu0 }
 0x51d   : > { %v2069_v44 = vadd.f32 %v4298_v48, %v2054_v3  ;;  %v2092_v32 = vadd.f32 %v2084_v22, %v2076_v27  ;;  %v2605_v20 = vadd.f32 %v2604_v61, %v2603_v6  ;;  %v2034_v47 = vadd.f32 %v4259_v23, %v1929_v38 }
 0x51e   : > { %v2086_v23 = vadd.f32 %v4218_v10, %v4275_v36 }
 0x51f   : > { %v2077_v33 = vmax.f32 %v2069_v44, 0.0  ;;  %2100 = vst [vmem:[%s4312_s24 + $0x20] sm:$0xff] %v2092_v32  ;;  %v1934_v17 = vadd.f32 %v2605_v20, %v4287_v41  ;;  %v2055_v24 = vmul.f32 %v4292_v49, %v2034_v47 }
 0x521   : > { %v2093_v43 = vadd.f32 %v2085_v13, %v2077_v33  ;;  %v2039_v12 = vadd.f32 %v4257_v7, %v1934_v17  ;;  %v2070_v54 = vadd.f32 %v4298_v48, %v2055_v24  ;;  %v2087_v7 = vadd.f32 %v4149_v16, %v4273_v35 }
 0x523   : > { %2101 = vst [vmem:[%s4312_s24 + $0x28] sm:$0xff] %v2093_v43  ;;  %v2056_v14 = vmul.f32 %v4292_v49, %v2039_v12  ;;  %v2078_v9 = vmax.f32 %v2070_v54, 0.0 }
 0x525   : > { %v2071_v52 = vadd.f32 %v4298_v48, %v2056_v14  ;;  %v2094_v41 = vadd.f32 %v2086_v23, %v2078_v9 }
 0x527   : > { %v2079_v2 = vmax.f32 %v2071_v52, 0.0  ;;  %2102 = vst [vmem:[%s4312_s24 + $0x30] sm:$0xff] %v2094_v41 }
 0x529   : > { %v2095_v10 = vadd.f32 %v2087_v7, %v2079_v2 }
 0x52b   : > { %2103 = vst [vmem:[%s4312_s24 + $0x38] sm:$0xff] %v2095_v10 }
 0x52c   : > { %3476 = shalt.err (!%p3473_p8)
}
 0x52d   : > { %s3477_s25 = scalar_lea.hbm %s4357_s15, 1024  ;;  %s3481_s1 = scalar_lea.hbm %s4444_s13, 2048 }
 0x52e   : > { %p3478_p6 = scmp.ne.s32.totalorder %s4357_s15, %s3477_s25  ;;  %p3482_p3 = scmp.lt.u32.totalorder %s4357_s15, %s4444_s13 }
 0x52f   : > { %p3483_p5 = scmp.lt.u32.totalorder %s3481_s1, %s3477_s25  ;;  %p3485_p7 = scmp.lt.u32.totalorder %s3477_s25, %s4357_s15 }
 0x530   : > { %p3479_p10 = pnand %p3478_p6, %p4445_p4 }
 0x531   : > { %p3484_p9 = por %p3483_p5, %p3482_p3 }
 0x532   : > { %p3480_p11 = pneg %p3479_p10 }
 0x533   : > { %p3486_p12 = por %p3485_p7, %p3484_p9 }
 0x535   : > { %p3487_p1 = pnand %p3486_p12, %p3480_p11 }
 0x537   : > { %3490 = shalt.err (!%p3487_p1)
}
 0x538   : > { %s3554_s23 = smov 128   ;;  %s3555_s22 = smov 8  }
 0x539   : > { %3172 = dma.vmem_to_hbm [thread:$0]  (%p4445_p4), %s4359_s12, 1024, %s4357_s15, %s2105_s26, %s3554_s23, %s3554_s23, %s3555_s22  }
 0x53a PF: > { %s2133_s16 = sand.u32 1, %s3529_s17   ;;  %p4446_p13 = scmp.ne.s32.totalorder %s4432_s28, 0 }
 0x53b   : > { %p4447_p0 = scmp.ge.s32.totalorder %s3541_s20, 2  ;;  %s2134_s30 = scalar_lea.sflag [#allocation4], %s2133_s16 }
 0x53d   : > { %p3195_p2 = pnand %p4447_p0, %p4446_p13 }
 0x53f   : > { %3524 = dma.done.wait (!%p3195_p2), %s2134_s30, 1024  }
 0x540   : > { %3526 = vsyncadd (!%p3195_p2), %s2134_s30, 4294966272  ;;  %p27_p8 = scmp.ge.s32.totalorder %s3786_s10, 4   ;;  %s4448_s17 = smov %s3533_s18 }
 0x541   : > { %s4449_s18 = smov %s3537_s19  ;;  %s4450_s19 = smov %s3798_s21 }
 0x542   : > { %s4451_s20 = smov %s3786_s10  ;;  %29 = sbr.rel (!%p27_p8) target bundleno = 13 (0xd), region = 129 }
 0x549   :  { %2139 = vsyncpa [#allocation3], 1 }
 0x54a   :  { %2141 = vsyncpa [#allocation3 + $0x1], 1 }
 0x54b   :  { %2142 = vsyncpa [#allocation6], 1 }
 0x54c   :  { %2143 = vsyncpa [#allocation9], 1 }
 0x54d   :  { %2144 = vsyncpa [#allocation12], 1 }
 0x54e   :  { %2145 = vsyncpa [#allocation4], 1 }
 0x54f   :  { %2147 = vsyncpa [#allocation4 + $0x1], 1 }

</bundles_post_ra>
